<compile_context>
chip_gen: v5e
topology: v5e:2x2
jax: 0.10.0
libtpu: 0.0.40
codegen_flags: <defaults>
</compile_context>

<pallas_src>
import numpy as np
import jax
import jax.numpy as jnp
from jax.experimental import pallas as pl
from jax.experimental.pallas import tpu as pltpu

EPS = 1e-5  # nn.InstanceNorm2d default eps, affine=False, biased variance


# ---------------------------------------------------------------------------
# Host-side helpers
# ---------------------------------------------------------------------------
def _make_tap_masks(H, W):
    """masks[k, 0, p] = 1 iff the k-th 3x3 tap of output pixel p is inside the
    image (zero-padding handled by zeroing out-of-bounds taps)."""
    HW = H * W
    masks = np.zeros((9, 1, HW), np.float32)
    for kh in range(3):
        for kw in range(3):
            k = kh * 3 + kw
            dh, dw = kh - 1, kw - 1
            for h in range(H):
                for w in range(W):
                    if 0 <= h + dh < H and 0 <= w + dw < W:
                        masks[k, 0, h * W + w] = 1.0
    return jnp.asarray(masks)


def _full_spec(a):
    nd = a.ndim
    return pl.BlockSpec(a.shape, lambda n, _nd=nd: (0,) * _nd)


def _batch_per_step(N):
    """v7x has 2 TensorCores -> keep 1 batch element per grid step so
    dimension_semantics=("parallel",) shards across cores.  Single-TC chips
    (v5e/v6e) fuse the whole batch into one grid step: per-step pipeline
    overhead dominates this tiny, overhead-bound kernel."""
    try:
        kind = jax.devices()[0].device_kind.lower()
    except Exception:
        kind = ""
    if "v7" in kind or "7x" in kind:
        return 1
    return N


# ---------------------------------------------------------------------------
# Pallas kernel (built per-shape so tap shifts / unroll counts are static)
# ---------------------------------------------------------------------------
def _build_kernel(H, W, Cin, Cout, nb):
    HW = H * W
    # flat-index offset of tap (kh, kw); roll amount = (-offset) mod HW so that
    # rolled[p] == x[p + offset] (wrap positions are zeroed by the tap mask).
    shifts = [(-((kh - 1) * W + (kw - 1))) % HW
              for kh in range(3) for kw in range(3)]

    def adain_relu(t, mu, sig):
        # t: [C, HW] f32, mu/sig: [C, 1] f32  (biased variance, like InstanceNorm2d)
        mean = jnp.mean(t, axis=1, keepdims=True)
        var = jnp.mean(jnp.square(t - mean), axis=1, keepdims=True)
        tn = (t - mean) * jax.lax.rsqrt(var + EPS)
        return jnp.maximum(tn * sig + mu, 0.0)

    def conv3x3(h, w_ref, b_ref, mask_ref):
        # h: [C, HW] f32; w_ref: Ref [9, Cout, C] f32.
        # 9 accumulated MXU dots; taps built directly in vregs (roll + mask),
        # no im2col scratch and no VMEM store->load round-trip.
        acc = None
        for k in range(9):
            s = shifts[k]
            shifted = h if s == 0 else pltpu.roll(h, s, axis=1)
            tap = shifted * mask_ref[k]                       # zero-pad boundary taps
            d = jnp.dot(w_ref[k], tap, preferred_element_type=jnp.float32)
            acc = d if acc is None else acc + d
        return acc + b_ref[...]                               # [Cout, HW] f32

    def kernel(x_ref, stats_ref, mask_ref, wskip_ref, bskip_ref,
               w1_ref, b1_ref, w2_ref, b2_ref, o_ref):
        for b in range(nb):          # static unroll over batch elements in this step
            x = x_ref[b]                                      # [Cin, HW] f32
            st = stats_ref[b]                                 # [2*(Cin+Cout), 1] f32
            mu1, sig1 = st[0:Cin], st[Cin:2 * Cin]
            mu2 = st[2 * Cin:2 * Cin + Cout]
            sig2 = st[2 * Cin + Cout:2 * (Cin + Cout)]

            # skip path: 1x1 conv, f32 MXU (kept f32 for parity with the reference)
            x_skip = jnp.dot(wskip_ref[...], x,
                             preferred_element_type=jnp.float32) + bskip_ref[...]

            # main path
            h = adain_relu(x, mu1, sig1)
            h = conv3x3(h, w1_ref, b1_ref, mask_ref)
            h = adain_relu(h, mu2, sig2)
            h = conv3x3(h, w2_ref, b2_ref, mask_ref)

            o_ref[b] = h + x_skip

    return kernel


# ---------------------------------------------------------------------------
# Host-side wrapper
# ---------------------------------------------------------------------------
def resblock_pallas(x, style, params):
    N, Cin, H, W = x.shape
    Cout = params["w1"].shape[0]
    HW = H * W
    nb = _batch_per_step(N)            # batch elements per grid step

    xf = x.reshape(N, Cin, HW).astype(jnp.float32)
    masks = _make_tap_masks(H, W)

    # AdaIN style projections hoisted to the host (tiny XLA matmul); packed into
    # ONE per-batch stats tensor so the kernel sees a single DMA descriptor
    # instead of four lane-width-1 tiles.  Layout: [mu1|sig1|mu2|sig2] on sublanes.
    sf = style.astype(jnp.float32)
    stats1 = sf @ params["wlin1"].T + params["blin1"]        # [N, 2*Cin]
    stats2 = sf @ params["wlin2"].T + params["blin2"]        # [N, 2*Cout]
    stats = jnp.concatenate([stats1, stats2], axis=1)[:, :, None]   # [N, 2*(Cin+Cout), 1]

    # conv weights tap-major: [Cout, Cin, 3, 3] -> [9, Cout, Cin]; tap k = kh*3+kw
    # matches the kernel's roll/mask loop order.
    w1t = jnp.transpose(params["w1"], (2, 3, 0, 1)).reshape(9, Cout, Cin).astype(jnp.float32)
    w2t = jnp.transpose(params["w2"], (2, 3, 0, 1)).reshape(9, Cout, Cout).astype(jnp.float32)
    b1 = params["b1"].reshape(Cout, 1).astype(jnp.float32)
    b2 = params["b2"].reshape(Cout, 1).astype(jnp.float32)
    wskip = params["wskip"].reshape(Cout, Cin).astype(jnp.float32)
    bskip = params["bskip"].reshape(Cout, 1).astype(jnp.float32)

    args = (xf, stats, masks, wskip, bskip, w1t, b1, w2t, b2)

    in_specs = [
        pl.BlockSpec((nb, Cin, HW), lambda n: (n, 0, 0)),               # x tile(s)
        pl.BlockSpec((nb, 2 * (Cin + Cout), 1), lambda n: (n, 0, 0)),   # packed mu/sigma
    ] + [_full_spec(a) for a in args[2:]]                               # params (whole arrays)

    kernel = _build_kernel(H, W, Cin, Cout, nb)

    flops = 2 * N * HW * (9 * Cin * Cout + 9 * Cout * Cout + Cin * Cout)
    bytes_accessed = int(sum(a.size * a.dtype.itemsize for a in args)
                         + N * Cout * HW * 4)

    out = pl.pallas_call(
        kernel,
        out_shape=jax.ShapeDtypeStruct((N, Cout, HW), jnp.float32),
        grid_spec=pltpu.PrefetchScalarGridSpec(
            num_scalar_prefetch=0,
            grid=(N // nb,),
            in_specs=in_specs,
            out_specs=pl.BlockSpec((nb, Cout, HW), lambda n: (n, 0, 0)),
        ),
        compiler_params=pltpu.CompilerParams(dimension_semantics=("parallel",)),
        cost_estimate=pl.CostEstimate(flops=flops,
                                      transcendentals=N * (Cin + Cout),
                                      bytes_accessed=bytes_accessed),
    )(*args)

    return out.reshape(N, Cout, H, W)


# ---------------------------------------------------------------------------
# Pure-JAX reference (mirrors the PyTorch forward exactly)
# ---------------------------------------------------------------------------
def resblock_ref(x, style, params):
    def inorm(t):
        m = t.mean(axis=(2, 3), keepdims=True)
        v = jnp.square(t - m).mean(axis=(2, 3), keepdims=True)
        return (t - m) / jnp.sqrt(v + EPS)

    def adain(t, w, b):
        C = t.shape[1]
        stats = style @ w.T + b                       # [N, 2C]
        mu = stats[:, :C][:, :, None, None]
        sig = stats[:, C:][:, :, None, None]
        return inorm(t) * sig + mu

    def conv(t, w, b, pad):
        y = jax.lax.conv_general_dilated(
            t, w, window_strides=(1, 1), padding=[(pad, pad), (pad, pad)],
            dimension_numbers=("NCHW", "OIHW", "NCHW"))
        return y + b[None, :, None, None]

    x_skip = conv(x, params["wskip"], params["bskip"], 0)
    h = adain(x, params["wlin1"], params["blin1"])
    h = jax.nn.relu(h)
    h = conv(h, params["w1"], params["b1"], 1)
    h = adain(h, params["wlin2"], params["blin2"])
    h = jax.nn.relu(h)
    h = conv(h, params["w2"], params["b2"], 1)
    return h + x_skip


# ---------------------------------------------------------------------------
if __name__ == "__main__":
    N, Cin, Cout, H, W, S = 2, 4, 8, 16, 16, 16

    key = jax.random.PRNGKey(0)
    ks = jax.random.split(key, 12)
    f32 = jnp.float32
    params = {
        "wskip": 0.2 * jax.random.normal(ks[0], (Cout, Cin, 1, 1), f32),
        "bskip": 0.05 * jax.random.normal(ks[1], (Cout,), f32),
        "w1":    0.2 * jax.random.normal(ks[2], (Cout, Cin, 3, 3), f32),
        "b1":    0.05 * jax.random.normal(ks[3], (Cout,), f32),
        "w2":    0.2 * jax.random.normal(ks[4], (Cout, Cout, 3, 3), f32),
        "b2":    0.05 * jax.random.normal(ks[5], (Cout,), f32),
        "wlin1": 0.2 * jax.random.normal(ks[6], (2 * Cin, S), f32),
        "blin1": 0.05 * jax.random.normal(ks[7], (2 * Cin,), f32),
        "wlin2": 0.2 * jax.random.normal(ks[8], (2 * Cout, S), f32),
        "blin2": 0.05 * jax.random.normal(ks[9], (2 * Cout,), f32),
    }
    x = jax.random.normal(ks[10], (N, Cin, H, W), f32)        # NCHW, like PyTorch
    style_code = jax.random.normal(ks[11], (N, S), f32)

    out = resblock_pallas(x, style_code, params)
    out = jax.block_until_ready(out)

    ref = resblock_ref(x, style_code, params)
    np.testing.assert_allclose(np.asarray(out), np.asarray(ref), rtol=2e-2, atol=2e-2)

    print("KERNEL_OK")
</pallas_src>

<mosaic_0001>
module attributes {stable_mosaic.version = 11 : i64} {
  func.func @kernel(%arg0: i32, %arg1: memref<2x4x256xf32, #tpu.memory_space<vmem>>, %arg2: memref<2x24x1xf32, #tpu.memory_space<vmem>>, %arg3: memref<9x1x256xf32, #tpu.memory_space<vmem>>, %arg4: memref<8x4xf32, #tpu.memory_space<vmem>>, %arg5: memref<8x1xf32, #tpu.memory_space<vmem>>, %arg6: memref<9x8x4xf32, #tpu.memory_space<vmem>>, %arg7: memref<8x1xf32, #tpu.memory_space<vmem>>, %arg8: memref<9x8x8xf32, #tpu.memory_space<vmem>>, %arg9: memref<8x1xf32, #tpu.memory_space<vmem>>, %arg10: memref<2x8x256xf32, #tpu.memory_space<vmem>>) attributes {dimension_semantics = [#tpu.dimension_semantics<parallel>], iteration_bounds = array<i64: 1>, scalar_prefetch = 0 : i64, scratch_operands = 0 : i64, tpu.core_type = #tpu.core_type<tc>, window_params = [{transform_indices = @transform_0, window_bounds = array<i64: 2, 4, 256>}, {transform_indices = @transform_1, window_bounds = array<i64: 2, 24, 1>}, {pipeline_mode = #tpu.pipeline_mode<synchronous>, transform_indices = @transform_2, window_bounds = array<i64: 9, 1, 256>}, {pipeline_mode = #tpu.pipeline_mode<synchronous>, transform_indices = @transform_3, window_bounds = array<i64: 8, 4>}, {pipeline_mode = #tpu.pipeline_mode<synchronous>, transform_indices = @transform_4, window_bounds = array<i64: 8, 1>}, {pipeline_mode = #tpu.pipeline_mode<synchronous>, transform_indices = @transform_5, window_bounds = array<i64: 9, 8, 4>}, {pipeline_mode = #tpu.pipeline_mode<synchronous>, transform_indices = @transform_6, window_bounds = array<i64: 8, 1>}, {pipeline_mode = #tpu.pipeline_mode<synchronous>, transform_indices = @transform_7, window_bounds = array<i64: 9, 8, 8>}, {pipeline_mode = #tpu.pipeline_mode<synchronous>, transform_indices = @transform_8, window_bounds = array<i64: 8, 1>}, {transform_indices = @transform_9, window_bounds = array<i64: 2, 8, 256>}]} {
    %c0 = arith.constant 0 : index
    %c0_0 = arith.constant 0 : index
    %c0_1 = arith.constant 0 : index
    %0 = vector.load %arg1[%c0, %c0_0, %c0_1] : memref<2x4x256xf32, #tpu.memory_space<vmem>>, vector<1x4x256xf32>
    %1 = vector.shape_cast %0 : vector<1x4x256xf32> to vector<4x256xf32>
    %c0_2 = arith.constant 0 : index
    %c0_3 = arith.constant 0 : index
    %c0_4 = arith.constant 0 : index
    %2 = vector.load %arg2[%c0_2, %c0_3, %c0_4] : memref<2x24x1xf32, #tpu.memory_space<vmem>>, vector<1x24x1xf32>
    %3 = vector.shape_cast %2 : vector<1x24x1xf32> to vector<24x1xf32>
    %4 = vector.extract_strided_slice %3 {offsets = [0, 0], sizes = [4, 1], strides = [1, 1]} : vector<24x1xf32> to vector<4x1xf32>
    %5 = vector.extract_strided_slice %3 {offsets = [4, 0], sizes = [4, 1], strides = [1, 1]} : vector<24x1xf32> to vector<4x1xf32>
    %6 = vector.extract_strided_slice %3 {offsets = [8, 0], sizes = [8, 1], strides = [1, 1]} : vector<24x1xf32> to vector<8x1xf32>
    %7 = vector.extract_strided_slice %3 {offsets = [16, 0], sizes = [8, 1], strides = [1, 1]} : vector<24x1xf32> to vector<8x1xf32>
    %c0_5 = arith.constant 0 : index
    %c0_6 = arith.constant 0 : index
    %8 = vector.load %arg4[%c0_5, %c0_6] : memref<8x4xf32, #tpu.memory_space<vmem>>, vector<8x4xf32>
    %cst = arith.constant dense<0.000000e+00> : vector<8x256xf32>
    %9 = tpu.matmul %8, %1, %cst {dimension_numbers = #tpu.dot_dimension_numbers<[1], [0], [0], [1], [0, 0, 1, 1], [], []>} : vector<8x4xf32>, vector<4x256xf32>, vector<8x256xf32> -> vector<8x256xf32>
    %c0_7 = arith.constant 0 : index
    %c0_8 = arith.constant 0 : index
    %10 = vector.load %arg5[%c0_7, %c0_8] : memref<8x1xf32, #tpu.memory_space<vmem>>, vector<8x1xf32>
    %11 = vector.broadcast %10 : vector<8x1xf32> to vector<8x256xf32>
    %12 = arith.addf %9, %11 : vector<8x256xf32>
    %cst_9 = arith.constant dense<0.000000e+00> : vector<4xf32>
    %13 = vector.multi_reduction <add>, %1, %cst_9 [1] : vector<4x256xf32> to vector<4xf32>
    %14 = vector.shape_cast %13 : vector<4xf32> to vector<4x1xf32>
    %cst_10 = arith.constant 2.560000e+02 : f32
    %15 = vector.broadcast %cst_10 : f32 to vector<4x1xf32>
    %16 = arith.divf %14, %15 : vector<4x1xf32>
    %17 = vector.broadcast %16 : vector<4x1xf32> to vector<4x256xf32>
    %18 = arith.subf %1, %17 : vector<4x256xf32>
    %19 = arith.mulf %18, %18 : vector<4x256xf32>
    %cst_11 = arith.constant dense<0.000000e+00> : vector<4xf32>
    %20 = vector.multi_reduction <add>, %19, %cst_11 [1] : vector<4x256xf32> to vector<4xf32>
    %21 = vector.shape_cast %20 : vector<4xf32> to vector<4x1xf32>
    %cst_12 = arith.constant 2.560000e+02 : f32
    %22 = vector.broadcast %cst_12 : f32 to vector<4x1xf32>
    %23 = arith.divf %21, %22 : vector<4x1xf32>
    %24 = vector.broadcast %16 : vector<4x1xf32> to vector<4x256xf32>
    %25 = arith.subf %1, %24 : vector<4x256xf32>
    %cst_13 = arith.constant 9.99999974E-6 : f32
    %26 = vector.broadcast %cst_13 : f32 to vector<4x1xf32>
    %27 = arith.addf %23, %26 : vector<4x1xf32>
    %28 = math.rsqrt %27 : vector<4x1xf32>
    %29 = vector.broadcast %28 : vector<4x1xf32> to vector<4x256xf32>
    %30 = arith.mulf %25, %29 : vector<4x256xf32>
    %31 = vector.broadcast %5 : vector<4x1xf32> to vector<4x256xf32>
    %32 = arith.mulf %30, %31 : vector<4x256xf32>
    %33 = vector.broadcast %4 : vector<4x1xf32> to vector<4x256xf32>
    %34 = arith.addf %32, %33 : vector<4x256xf32>
    %cst_14 = arith.constant 0.000000e+00 : f32
    %35 = vector.broadcast %cst_14 : f32 to vector<4x256xf32>
    %36 = arith.maximumf %34, %35 : vector<4x256xf32>
    %c17_i32 = arith.constant 17 : i32
    %37 = tpu.dynamic_rotate %36 by %c17_i32 dim 1 : vector<4x256xf32>, i32 -> vector<4x256xf32>
    %c0_15 = arith.constant 0 : index
    %c0_16 = arith.constant 0 : index
    %c0_17 = arith.constant 0 : index
    %38 = vector.load %arg3[%c0_15, %c0_16, %c0_17] : memref<9x1x256xf32, #tpu.memory_space<vmem>>, vector<1x1x256xf32>
    %39 = vector.shape_cast %38 : vector<1x1x256xf32> to vector<1x256xf32>
    %40 = vector.broadcast %39 : vector<1x256xf32> to vector<4x256xf32>
    %41 = arith.mulf %37, %40 : vector<4x256xf32>
    %c0_18 = arith.constant 0 : index
    %c0_19 = arith.constant 0 : index
    %c0_20 = arith.constant 0 : index
    %42 = vector.load %arg6[%c0_18, %c0_19, %c0_20] : memref<9x8x4xf32, #tpu.memory_space<vmem>>, vector<1x8x4xf32>
    %43 = vector.shape_cast %42 : vector<1x8x4xf32> to vector<8x4xf32>
    %cst_21 = arith.constant dense<0.000000e+00> : vector<8x256xf32>
    %44 = tpu.matmul %43, %41, %cst_21 {dimension_numbers = #tpu.dot_dimension_numbers<[1], [0], [0], [1], [0, 0, 1, 1], [], []>} : vector<8x4xf32>, vector<4x256xf32>, vector<8x256xf32> -> vector<8x256xf32>
    %c16_i32 = arith.constant 16 : i32
    %45 = tpu.dynamic_rotate %36 by %c16_i32 dim 1 : vector<4x256xf32>, i32 -> vector<4x256xf32>
    %c1 = arith.constant 1 : index
    %c0_22 = arith.constant 0 : index
    %c0_23 = arith.constant 0 : index
    %46 = vector.load %arg3[%c1, %c0_22, %c0_23] : memref<9x1x256xf32, #tpu.memory_space<vmem>>, vector<1x1x256xf32>
    %47 = vector.shape_cast %46 : vector<1x1x256xf32> to vector<1x256xf32>
    %48 = vector.broadcast %47 : vector<1x256xf32> to vector<4x256xf32>
    %49 = arith.mulf %45, %48 : vector<4x256xf32>
    %c1_24 = arith.constant 1 : index
    %c0_25 = arith.constant 0 : index
    %c0_26 = arith.constant 0 : index
    %50 = vector.load %arg6[%c1_24, %c0_25, %c0_26] : memref<9x8x4xf32, #tpu.memory_space<vmem>>, vector<1x8x4xf32>
    %51 = vector.shape_cast %50 : vector<1x8x4xf32> to vector<8x4xf32>
    %cst_27 = arith.constant dense<0.000000e+00> : vector<8x256xf32>
    %52 = tpu.matmul %51, %49, %cst_27 {dimension_numbers = #tpu.dot_dimension_numbers<[1], [0], [0], [1], [0, 0, 1, 1], [], []>} : vector<8x4xf32>, vector<4x256xf32>, vector<8x256xf32> -> vector<8x256xf32>
    %53 = arith.addf %44, %52 : vector<8x256xf32>
    %c15_i32 = arith.constant 15 : i32
    %54 = tpu.dynamic_rotate %36 by %c15_i32 dim 1 : vector<4x256xf32>, i32 -> vector<4x256xf32>
    %c2 = arith.constant 2 : index
    %c0_28 = arith.constant 0 : index
    %c0_29 = arith.constant 0 : index
    %55 = vector.load %arg3[%c2, %c0_28, %c0_29] : memref<9x1x256xf32, #tpu.memory_space<vmem>>, vector<1x1x256xf32>
    %56 = vector.shape_cast %55 : vector<1x1x256xf32> to vector<1x256xf32>
    %57 = vector.broadcast %56 : vector<1x256xf32> to vector<4x256xf32>
    %58 = arith.mulf %54, %57 : vector<4x256xf32>
    %c2_30 = arith.constant 2 : index
    %c0_31 = arith.constant 0 : index
    %c0_32 = arith.constant 0 : index
    %59 = vector.load %arg6[%c2_30, %c0_31, %c0_32] : memref<9x8x4xf32, #tpu.memory_space<vmem>>, vector<1x8x4xf32>
    %60 = vector.shape_cast %59 : vector<1x8x4xf32> to vector<8x4xf32>
    %cst_33 = arith.constant dense<0.000000e+00> : vector<8x256xf32>
    %61 = tpu.matmul %60, %58, %cst_33 {dimension_numbers = #tpu.dot_dimension_numbers<[1], [0], [0], [1], [0, 0, 1, 1], [], []>} : vector<8x4xf32>, vector<4x256xf32>, vector<8x256xf32> -> vector<8x256xf32>
    %62 = arith.addf %53, %61 : vector<8x256xf32>
    %c1_i32 = arith.constant 1 : i32
    %63 = tpu.dynamic_rotate %36 by %c1_i32 dim 1 : vector<4x256xf32>, i32 -> vector<4x256xf32>
    %c3 = arith.constant 3 : index
    %c0_34 = arith.constant 0 : index
    %c0_35 = arith.constant 0 : index
    %64 = vector.load %arg3[%c3, %c0_34, %c0_35] : memref<9x1x256xf32, #tpu.memory_space<vmem>>, vector<1x1x256xf32>
    %65 = vector.shape_cast %64 : vector<1x1x256xf32> to vector<1x256xf32>
    %66 = vector.broadcast %65 : vector<1x256xf32> to vector<4x256xf32>
    %67 = arith.mulf %63, %66 : vector<4x256xf32>
    %c3_36 = arith.constant 3 : index
    %c0_37 = arith.constant 0 : index
    %c0_38 = arith.constant 0 : index
    %68 = vector.load %arg6[%c3_36, %c0_37, %c0_38] : memref<9x8x4xf32, #tpu.memory_space<vmem>>, vector<1x8x4xf32>
    %69 = vector.shape_cast %68 : vector<1x8x4xf32> to vector<8x4xf32>
    %cst_39 = arith.constant dense<0.000000e+00> : vector<8x256xf32>
    %70 = tpu.matmul %69, %67, %cst_39 {dimension_numbers = #tpu.dot_dimension_numbers<[1], [0], [0], [1], [0, 0, 1, 1], [], []>} : vector<8x4xf32>, vector<4x256xf32>, vector<8x256xf32> -> vector<8x256xf32>
    %71 = arith.addf %62, %70 : vector<8x256xf32>
    %c4 = arith.constant 4 : index
    %c0_40 = arith.constant 0 : index
    %c0_41 = arith.constant 0 : index
    %72 = vector.load %arg3[%c4, %c0_40, %c0_41] : memref<9x1x256xf32, #tpu.memory_space<vmem>>, vector<1x1x256xf32>
    %73 = vector.shape_cast %72 : vector<1x1x256xf32> to vector<1x256xf32>
    %74 = vector.broadcast %73 : vector<1x256xf32> to vector<4x256xf32>
    %75 = arith.mulf %36, %74 : vector<4x256xf32>
    %c4_42 = arith.constant 4 : index
    %c0_43 = arith.constant 0 : index
    %c0_44 = arith.constant 0 : index
    %76 = vector.load %arg6[%c4_42, %c0_43, %c0_44] : memref<9x8x4xf32, #tpu.memory_space<vmem>>, vector<1x8x4xf32>
    %77 = vector.shape_cast %76 : vector<1x8x4xf32> to vector<8x4xf32>
    %cst_45 = arith.constant dense<0.000000e+00> : vector<8x256xf32>
    %78 = tpu.matmul %77, %75, %cst_45 {dimension_numbers = #tpu.dot_dimension_numbers<[1], [0], [0], [1], [0, 0, 1, 1], [], []>} : vector<8x4xf32>, vector<4x256xf32>, vector<8x256xf32> -> vector<8x256xf32>
    %79 = arith.addf %71, %78 : vector<8x256xf32>
    %c255_i32 = arith.constant 255 : i32
    %80 = tpu.dynamic_rotate %36 by %c255_i32 dim 1 : vector<4x256xf32>, i32 -> vector<4x256xf32>
    %c5 = arith.constant 5 : index
    %c0_46 = arith.constant 0 : index
    %c0_47 = arith.constant 0 : index
    %81 = vector.load %arg3[%c5, %c0_46, %c0_47] : memref<9x1x256xf32, #tpu.memory_space<vmem>>, vector<1x1x256xf32>
    %82 = vector.shape_cast %81 : vector<1x1x256xf32> to vector<1x256xf32>
    %83 = vector.broadcast %82 : vector<1x256xf32> to vector<4x256xf32>
    %84 = arith.mulf %80, %83 : vector<4x256xf32>
    %c5_48 = arith.constant 5 : index
    %c0_49 = arith.constant 0 : index
    %c0_50 = arith.constant 0 : index
    %85 = vector.load %arg6[%c5_48, %c0_49, %c0_50] : memref<9x8x4xf32, #tpu.memory_space<vmem>>, vector<1x8x4xf32>
    %86 = vector.shape_cast %85 : vector<1x8x4xf32> to vector<8x4xf32>
    %cst_51 = arith.constant dense<0.000000e+00> : vector<8x256xf32>
    %87 = tpu.matmul %86, %84, %cst_51 {dimension_numbers = #tpu.dot_dimension_numbers<[1], [0], [0], [1], [0, 0, 1, 1], [], []>} : vector<8x4xf32>, vector<4x256xf32>, vector<8x256xf32> -> vector<8x256xf32>
    %88 = arith.addf %79, %87 : vector<8x256xf32>
    %c241_i32 = arith.constant 241 : i32
    %89 = tpu.dynamic_rotate %36 by %c241_i32 dim 1 : vector<4x256xf32>, i32 -> vector<4x256xf32>
    %c6 = arith.constant 6 : index
    %c0_52 = arith.constant 0 : index
    %c0_53 = arith.constant 0 : index
    %90 = vector.load %arg3[%c6, %c0_52, %c0_53] : memref<9x1x256xf32, #tpu.memory_space<vmem>>, vector<1x1x256xf32>
    %91 = vector.shape_cast %90 : vector<1x1x256xf32> to vector<1x256xf32>
    %92 = vector.broadcast %91 : vector<1x256xf32> to vector<4x256xf32>
    %93 = arith.mulf %89, %92 : vector<4x256xf32>
    %c6_54 = arith.constant 6 : index
    %c0_55 = arith.constant 0 : index
    %c0_56 = arith.constant 0 : index
    %94 = vector.load %arg6[%c6_54, %c0_55, %c0_56] : memref<9x8x4xf32, #tpu.memory_space<vmem>>, vector<1x8x4xf32>
    %95 = vector.shape_cast %94 : vector<1x8x4xf32> to vector<8x4xf32>
    %cst_57 = arith.constant dense<0.000000e+00> : vector<8x256xf32>
    %96 = tpu.matmul %95, %93, %cst_57 {dimension_numbers = #tpu.dot_dimension_numbers<[1], [0], [0], [1], [0, 0, 1, 1], [], []>} : vector<8x4xf32>, vector<4x256xf32>, vector<8x256xf32> -> vector<8x256xf32>
    %97 = arith.addf %88, %96 : vector<8x256xf32>
    %c240_i32 = arith.constant 240 : i32
    %98 = tpu.dynamic_rotate %36 by %c240_i32 dim 1 : vector<4x256xf32>, i32 -> vector<4x256xf32>
    %c7 = arith.constant 7 : index
    %c0_58 = arith.constant 0 : index
    %c0_59 = arith.constant 0 : index
    %99 = vector.load %arg3[%c7, %c0_58, %c0_59] : memref<9x1x256xf32, #tpu.memory_space<vmem>>, vector<1x1x256xf32>
    %100 = vector.shape_cast %99 : vector<1x1x256xf32> to vector<1x256xf32>
    %101 = vector.broadcast %100 : vector<1x256xf32> to vector<4x256xf32>
    %102 = arith.mulf %98, %101 : vector<4x256xf32>
    %c7_60 = arith.constant 7 : index
    %c0_61 = arith.constant 0 : index
    %c0_62 = arith.constant 0 : index
    %103 = vector.load %arg6[%c7_60, %c0_61, %c0_62] : memref<9x8x4xf32, #tpu.memory_space<vmem>>, vector<1x8x4xf32>
    %104 = vector.shape_cast %103 : vector<1x8x4xf32> to vector<8x4xf32>
    %cst_63 = arith.constant dense<0.000000e+00> : vector<8x256xf32>
    %105 = tpu.matmul %104, %102, %cst_63 {dimension_numbers = #tpu.dot_dimension_numbers<[1], [0], [0], [1], [0, 0, 1, 1], [], []>} : vector<8x4xf32>, vector<4x256xf32>, vector<8x256xf32> -> vector<8x256xf32>
    %106 = arith.addf %97, %105 : vector<8x256xf32>
    %c239_i32 = arith.constant 239 : i32
    %107 = tpu.dynamic_rotate %36 by %c239_i32 dim 1 : vector<4x256xf32>, i32 -> vector<4x256xf32>
    %c8 = arith.constant 8 : index
    %c0_64 = arith.constant 0 : index
    %c0_65 = arith.constant 0 : index
    %108 = vector.load %arg3[%c8, %c0_64, %c0_65] : memref<9x1x256xf32, #tpu.memory_space<vmem>>, vector<1x1x256xf32>
    %109 = vector.shape_cast %108 : vector<1x1x256xf32> to vector<1x256xf32>
    %110 = vector.broadcast %109 : vector<1x256xf32> to vector<4x256xf32>
    %111 = arith.mulf %107, %110 : vector<4x256xf32>
    %c8_66 = arith.constant 8 : index
    %c0_67 = arith.constant 0 : index
    %c0_68 = arith.constant 0 : index
    %112 = vector.load %arg6[%c8_66, %c0_67, %c0_68] : memref<9x8x4xf32, #tpu.memory_space<vmem>>, vector<1x8x4xf32>
    %113 = vector.shape_cast %112 : vector<1x8x4xf32> to vector<8x4xf32>
    %cst_69 = arith.constant dense<0.000000e+00> : vector<8x256xf32>
    %114 = tpu.matmul %113, %111, %cst_69 {dimension_numbers = #tpu.dot_dimension_numbers<[1], [0], [0], [1], [0, 0, 1, 1], [], []>} : vector<8x4xf32>, vector<4x256xf32>, vector<8x256xf32> -> vector<8x256xf32>
    %115 = arith.addf %106, %114 : vector<8x256xf32>
    %c0_70 = arith.constant 0 : index
    %c0_71 = arith.constant 0 : index
    %116 = vector.load %arg7[%c0_70, %c0_71] : memref<8x1xf32, #tpu.memory_space<vmem>>, vector<8x1xf32>
    %117 = vector.broadcast %116 : vector<8x1xf32> to vector<8x256xf32>
    %118 = arith.addf %115, %117 : vector<8x256xf32>
    %cst_72 = arith.constant dense<0.000000e+00> : vector<8xf32>
    %119 = vector.multi_reduction <add>, %118, %cst_72 [1] : vector<8x256xf32> to vector<8xf32>
    %120 = vector.shape_cast %119 : vector<8xf32> to vector<8x1xf32>
    %cst_73 = arith.constant 2.560000e+02 : f32
    %121 = vector.broadcast %cst_73 : f32 to vector<8x1xf32>
    %122 = arith.divf %120, %121 : vector<8x1xf32>
    %123 = vector.broadcast %122 : vector<8x1xf32> to vector<8x256xf32>
    %124 = arith.subf %118, %123 : vector<8x256xf32>
    %125 = arith.mulf %124, %124 : vector<8x256xf32>
    %cst_74 = arith.constant dense<0.000000e+00> : vector<8xf32>
    %126 = vector.multi_reduction <add>, %125, %cst_74 [1] : vector<8x256xf32> to vector<8xf32>
    %127 = vector.shape_cast %126 : vector<8xf32> to vector<8x1xf32>
    %cst_75 = arith.constant 2.560000e+02 : f32
    %128 = vector.broadcast %cst_75 : f32 to vector<8x1xf32>
    %129 = arith.divf %127, %128 : vector<8x1xf32>
    %130 = vector.broadcast %122 : vector<8x1xf32> to vector<8x256xf32>
    %131 = arith.subf %118, %130 : vector<8x256xf32>
    %cst_76 = arith.constant 9.99999974E-6 : f32
    %132 = vector.broadcast %cst_76 : f32 to vector<8x1xf32>
    %133 = arith.addf %129, %132 : vector<8x1xf32>
    %134 = math.rsqrt %133 : vector<8x1xf32>
    %135 = vector.broadcast %134 : vector<8x1xf32> to vector<8x256xf32>
    %136 = arith.mulf %131, %135 : vector<8x256xf32>
    %137 = vector.broadcast %7 : vector<8x1xf32> to vector<8x256xf32>
    %138 = arith.mulf %136, %137 : vector<8x256xf32>
    %139 = vector.broadcast %6 : vector<8x1xf32> to vector<8x256xf32>
    %140 = arith.addf %138, %139 : vector<8x256xf32>
    %cst_77 = arith.constant 0.000000e+00 : f32
    %141 = vector.broadcast %cst_77 : f32 to vector<8x256xf32>
    %142 = arith.maximumf %140, %141 : vector<8x256xf32>
    %c17_i32_78 = arith.constant 17 : i32
    %143 = tpu.dynamic_rotate %142 by %c17_i32_78 dim 1 : vector<8x256xf32>, i32 -> vector<8x256xf32>
    %c0_79 = arith.constant 0 : index
    %c0_80 = arith.constant 0 : index
    %c0_81 = arith.constant 0 : index
    %144 = vector.load %arg3[%c0_79, %c0_80, %c0_81] : memref<9x1x256xf32, #tpu.memory_space<vmem>>, vector<1x1x256xf32>
    %145 = vector.shape_cast %144 : vector<1x1x256xf32> to vector<1x256xf32>
    %146 = vector.broadcast %145 : vector<1x256xf32> to vector<8x256xf32>
    %147 = arith.mulf %143, %146 : vector<8x256xf32>
    %c0_82 = arith.constant 0 : index
    %c0_83 = arith.constant 0 : index
    %c0_84 = arith.constant 0 : index
    %148 = vector.load %arg8[%c0_82, %c0_83, %c0_84] : memref<9x8x8xf32, #tpu.memory_space<vmem>>, vector<1x8x8xf32>
    %149 = vector.shape_cast %148 : vector<1x8x8xf32> to vector<8x8xf32>
    %cst_85 = arith.constant dense<0.000000e+00> : vector<8x256xf32>
    %150 = tpu.matmul %149, %147, %cst_85 {dimension_numbers = #tpu.dot_dimension_numbers<[1], [0], [0], [1], [0, 0, 1, 1], [], []>} : vector<8x8xf32>, vector<8x256xf32>, vector<8x256xf32> -> vector<8x256xf32>
    %c16_i32_86 = arith.constant 16 : i32
    %151 = tpu.dynamic_rotate %142 by %c16_i32_86 dim 1 : vector<8x256xf32>, i32 -> vector<8x256xf32>
    %c1_87 = arith.constant 1 : index
    %c0_88 = arith.constant 0 : index
    %c0_89 = arith.constant 0 : index
    %152 = vector.load %arg3[%c1_87, %c0_88, %c0_89] : memref<9x1x256xf32, #tpu.memory_space<vmem>>, vector<1x1x256xf32>
    %153 = vector.shape_cast %152 : vector<1x1x256xf32> to vector<1x256xf32>
    %154 = vector.broadcast %153 : vector<1x256xf32> to vector<8x256xf32>
    %155 = arith.mulf %151, %154 : vector<8x256xf32>
    %c1_90 = arith.constant 1 : index
    %c0_91 = arith.constant 0 : index
    %c0_92 = arith.constant 0 : index
    %156 = vector.load %arg8[%c1_90, %c0_91, %c0_92] : memref<9x8x8xf32, #tpu.memory_space<vmem>>, vector<1x8x8xf32>
    %157 = vector.shape_cast %156 : vector<1x8x8xf32> to vector<8x8xf32>
    %cst_93 = arith.constant dense<0.000000e+00> : vector<8x256xf32>
    %158 = tpu.matmul %157, %155, %cst_93 {dimension_numbers = #tpu.dot_dimension_numbers<[1], [0], [0], [1], [0, 0, 1, 1], [], []>} : vector<8x8xf32>, vector<8x256xf32>, vector<8x256xf32> -> vector<8x256xf32>
    %159 = arith.addf %150, %158 : vector<8x256xf32>
    %c15_i32_94 = arith.constant 15 : i32
    %160 = tpu.dynamic_rotate %142 by %c15_i32_94 dim 1 : vector<8x256xf32>, i32 -> vector<8x256xf32>
    %c2_95 = arith.constant 2 : index
    %c0_96 = arith.constant 0 : index
    %c0_97 = arith.constant 0 : index
    %161 = vector.load %arg3[%c2_95, %c0_96, %c0_97] : memref<9x1x256xf32, #tpu.memory_space<vmem>>, vector<1x1x256xf32>
    %162 = vector.shape_cast %161 : vector<1x1x256xf32> to vector<1x256xf32>
    %163 = vector.broadcast %162 : vector<1x256xf32> to vector<8x256xf32>
    %164 = arith.mulf %160, %163 : vector<8x256xf32>
    %c2_98 = arith.constant 2 : index
    %c0_99 = arith.constant 0 : index
    %c0_100 = arith.constant 0 : index
    %165 = vector.load %arg8[%c2_98, %c0_99, %c0_100] : memref<9x8x8xf32, #tpu.memory_space<vmem>>, vector<1x8x8xf32>
    %166 = vector.shape_cast %165 : vector<1x8x8xf32> to vector<8x8xf32>
    %cst_101 = arith.constant dense<0.000000e+00> : vector<8x256xf32>
    %167 = tpu.matmul %166, %164, %cst_101 {dimension_numbers = #tpu.dot_dimension_numbers<[1], [0], [0], [1], [0, 0, 1, 1], [], []>} : vector<8x8xf32>, vector<8x256xf32>, vector<8x256xf32> -> vector<8x256xf32>
    %168 = arith.addf %159, %167 : vector<8x256xf32>
    %c1_i32_102 = arith.constant 1 : i32
    %169 = tpu.dynamic_rotate %142 by %c1_i32_102 dim 1 : vector<8x256xf32>, i32 -> vector<8x256xf32>
    %c3_103 = arith.constant 3 : index
    %c0_104 = arith.constant 0 : index
    %c0_105 = arith.constant 0 : index
    %170 = vector.load %arg3[%c3_103, %c0_104, %c0_105] : memref<9x1x256xf32, #tpu.memory_space<vmem>>, vector<1x1x256xf32>
    %171 = vector.shape_cast %170 : vector<1x1x256xf32> to vector<1x256xf32>
    %172 = vector.broadcast %171 : vector<1x256xf32> to vector<8x256xf32>
    %173 = arith.mulf %169, %172 : vector<8x256xf32>
    %c3_106 = arith.constant 3 : index
    %c0_107 = arith.constant 0 : index
    %c0_108 = arith.constant 0 : index
    %174 = vector.load %arg8[%c3_106, %c0_107, %c0_108] : memref<9x8x8xf32, #tpu.memory_space<vmem>>, vector<1x8x8xf32>
    %175 = vector.shape_cast %174 : vector<1x8x8xf32> to vector<8x8xf32>
    %cst_109 = arith.constant dense<0.000000e+00> : vector<8x256xf32>
    %176 = tpu.matmul %175, %173, %cst_109 {dimension_numbers = #tpu.dot_dimension_numbers<[1], [0], [0], [1], [0, 0, 1, 1], [], []>} : vector<8x8xf32>, vector<8x256xf32>, vector<8x256xf32> -> vector<8x256xf32>
    %177 = arith.addf %168, %176 : vector<8x256xf32>
    %c4_110 = arith.constant 4 : index
    %c0_111 = arith.constant 0 : index
    %c0_112 = arith.constant 0 : index
    %178 = vector.load %arg3[%c4_110, %c0_111, %c0_112] : memref<9x1x256xf32, #tpu.memory_space<vmem>>, vector<1x1x256xf32>
    %179 = vector.shape_cast %178 : vector<1x1x256xf32> to vector<1x256xf32>
    %180 = vector.broadcast %179 : vector<1x256xf32> to vector<8x256xf32>
    %181 = arith.mulf %142, %180 : vector<8x256xf32>
    %c4_113 = arith.constant 4 : index
    %c0_114 = arith.constant 0 : index
    %c0_115 = arith.constant 0 : index
    %182 = vector.load %arg8[%c4_113, %c0_114, %c0_115] : memref<9x8x8xf32, #tpu.memory_space<vmem>>, vector<1x8x8xf32>
    %183 = vector.shape_cast %182 : vector<1x8x8xf32> to vector<8x8xf32>
    %cst_116 = arith.constant dense<0.000000e+00> : vector<8x256xf32>
    %184 = tpu.matmul %183, %181, %cst_116 {dimension_numbers = #tpu.dot_dimension_numbers<[1], [0], [0], [1], [0, 0, 1, 1], [], []>} : vector<8x8xf32>, vector<8x256xf32>, vector<8x256xf32> -> vector<8x256xf32>
    %185 = arith.addf %177, %184 : vector<8x256xf32>
    %c255_i32_117 = arith.constant 255 : i32
    %186 = tpu.dynamic_rotate %142 by %c255_i32_117 dim 1 : vector<8x256xf32>, i32 -> vector<8x256xf32>
    %c5_118 = arith.constant 5 : index
    %c0_119 = arith.constant 0 : index
    %c0_120 = arith.constant 0 : index
    %187 = vector.load %arg3[%c5_118, %c0_119, %c0_120] : memref<9x1x256xf32, #tpu.memory_space<vmem>>, vector<1x1x256xf32>
    %188 = vector.shape_cast %187 : vector<1x1x256xf32> to vector<1x256xf32>
    %189 = vector.broadcast %188 : vector<1x256xf32> to vector<8x256xf32>
    %190 = arith.mulf %186, %189 : vector<8x256xf32>
    %c5_121 = arith.constant 5 : index
    %c0_122 = arith.constant 0 : index
    %c0_123 = arith.constant 0 : index
    %191 = vector.load %arg8[%c5_121, %c0_122, %c0_123] : memref<9x8x8xf32, #tpu.memory_space<vmem>>, vector<1x8x8xf32>
    %192 = vector.shape_cast %191 : vector<1x8x8xf32> to vector<8x8xf32>
    %cst_124 = arith.constant dense<0.000000e+00> : vector<8x256xf32>
    %193 = tpu.matmul %192, %190, %cst_124 {dimension_numbers = #tpu.dot_dimension_numbers<[1], [0], [0], [1], [0, 0, 1, 1], [], []>} : vector<8x8xf32>, vector<8x256xf32>, vector<8x256xf32> -> vector<8x256xf32>
    %194 = arith.addf %185, %193 : vector<8x256xf32>
    %c241_i32_125 = arith.constant 241 : i32
    %195 = tpu.dynamic_rotate %142 by %c241_i32_125 dim 1 : vector<8x256xf32>, i32 -> vector<8x256xf32>
    %c6_126 = arith.constant 6 : index
    %c0_127 = arith.constant 0 : index
    %c0_128 = arith.constant 0 : index
    %196 = vector.load %arg3[%c6_126, %c0_127, %c0_128] : memref<9x1x256xf32, #tpu.memory_space<vmem>>, vector<1x1x256xf32>
    %197 = vector.shape_cast %196 : vector<1x1x256xf32> to vector<1x256xf32>
    %198 = vector.broadcast %197 : vector<1x256xf32> to vector<8x256xf32>
    %199 = arith.mulf %195, %198 : vector<8x256xf32>
    %c6_129 = arith.constant 6 : index
    %c0_130 = arith.constant 0 : index
    %c0_131 = arith.constant 0 : index
    %200 = vector.load %arg8[%c6_129, %c0_130, %c0_131] : memref<9x8x8xf32, #tpu.memory_space<vmem>>, vector<1x8x8xf32>
    %201 = vector.shape_cast %200 : vector<1x8x8xf32> to vector<8x8xf32>
    %cst_132 = arith.constant dense<0.000000e+00> : vector<8x256xf32>
    %202 = tpu.matmul %201, %199, %cst_132 {dimension_numbers = #tpu.dot_dimension_numbers<[1], [0], [0], [1], [0, 0, 1, 1], [], []>} : vector<8x8xf32>, vector<8x256xf32>, vector<8x256xf32> -> vector<8x256xf32>
    %203 = arith.addf %194, %202 : vector<8x256xf32>
    %c240_i32_133 = arith.constant 240 : i32
    %204 = tpu.dynamic_rotate %142 by %c240_i32_133 dim 1 : vector<8x256xf32>, i32 -> vector<8x256xf32>
    %c7_134 = arith.constant 7 : index
    %c0_135 = arith.constant 0 : index
    %c0_136 = arith.constant 0 : index
    %205 = vector.load %arg3[%c7_134, %c0_135, %c0_136] : memref<9x1x256xf32, #tpu.memory_space<vmem>>, vector<1x1x256xf32>
    %206 = vector.shape_cast %205 : vector<1x1x256xf32> to vector<1x256xf32>
    %207 = vector.broadcast %206 : vector<1x256xf32> to vector<8x256xf32>
    %208 = arith.mulf %204, %207 : vector<8x256xf32>
    %c7_137 = arith.constant 7 : index
    %c0_138 = arith.constant 0 : index
    %c0_139 = arith.constant 0 : index
    %209 = vector.load %arg8[%c7_137, %c0_138, %c0_139] : memref<9x8x8xf32, #tpu.memory_space<vmem>>, vector<1x8x8xf32>
    %210 = vector.shape_cast %209 : vector<1x8x8xf32> to vector<8x8xf32>
    %cst_140 = arith.constant dense<0.000000e+00> : vector<8x256xf32>
    %211 = tpu.matmul %210, %208, %cst_140 {dimension_numbers = #tpu.dot_dimension_numbers<[1], [0], [0], [1], [0, 0, 1, 1], [], []>} : vector<8x8xf32>, vector<8x256xf32>, vector<8x256xf32> -> vector<8x256xf32>
    %212 = arith.addf %203, %211 : vector<8x256xf32>
    %c239_i32_141 = arith.constant 239 : i32
    %213 = tpu.dynamic_rotate %142 by %c239_i32_141 dim 1 : vector<8x256xf32>, i32 -> vector<8x256xf32>
    %c8_142 = arith.constant 8 : index
    %c0_143 = arith.constant 0 : index
    %c0_144 = arith.constant 0 : index
    %214 = vector.load %arg3[%c8_142, %c0_143, %c0_144] : memref<9x1x256xf32, #tpu.memory_space<vmem>>, vector<1x1x256xf32>
    %215 = vector.shape_cast %214 : vector<1x1x256xf32> to vector<1x256xf32>
    %216 = vector.broadcast %215 : vector<1x256xf32> to vector<8x256xf32>
    %217 = arith.mulf %213, %216 : vector<8x256xf32>
    %c8_145 = arith.constant 8 : index
    %c0_146 = arith.constant 0 : index
    %c0_147 = arith.constant 0 : index
    %218 = vector.load %arg8[%c8_145, %c0_146, %c0_147] : memref<9x8x8xf32, #tpu.memory_space<vmem>>, vector<1x8x8xf32>
    %219 = vector.shape_cast %218 : vector<1x8x8xf32> to vector<8x8xf32>
    %cst_148 = arith.constant dense<0.000000e+00> : vector<8x256xf32>
    %220 = tpu.matmul %219, %217, %cst_148 {dimension_numbers = #tpu.dot_dimension_numbers<[1], [0], [0], [1], [0, 0, 1, 1], [], []>} : vector<8x8xf32>, vector<8x256xf32>, vector<8x256xf32> -> vector<8x256xf32>
    %221 = arith.addf %212, %220 : vector<8x256xf32>
    %c0_149 = arith.constant 0 : index
    %c0_150 = arith.constant 0 : index
    %222 = vector.load %arg9[%c0_149, %c0_150] : memref<8x1xf32, #tpu.memory_space<vmem>>, vector<8x1xf32>
    %223 = vector.broadcast %222 : vector<8x1xf32> to vector<8x256xf32>
    %224 = arith.addf %221, %223 : vector<8x256xf32>
    %225 = arith.addf %224, %12 : vector<8x256xf32>
    %c0_151 = arith.constant 0 : index
    %c0_152 = arith.constant 0 : index
    %c0_153 = arith.constant 0 : index
    %226 = vector.load %arg10[%c0_151, %c0_152, %c0_153] : memref<2x8x256xf32, #tpu.memory_space<vmem>>, vector<1x8x256xf32>
    %227 = vector.shape_cast %226 : vector<1x8x256xf32> to vector<8x256xf32>
    %228 = vector.shape_cast %225 : vector<8x256xf32> to vector<1x8x256xf32>
    tpu.vector_store %arg10[%c0_151, %c0_152, %c0_153], %228 {strides = array<i32>} : memref<2x8x256xf32, #tpu.memory_space<vmem>>, vector<1x8x256xf32>,
    %c1_154 = arith.constant 1 : index
    %c0_155 = arith.constant 0 : index
    %c0_156 = arith.constant 0 : index
    %229 = vector.load %arg1[%c1_154, %c0_155, %c0_156] : memref<2x4x256xf32, #tpu.memory_space<vmem>>, vector<1x4x256xf32>
    %230 = vector.shape_cast %229 : vector<1x4x256xf32> to vector<4x256xf32>
    %c1_157 = arith.constant 1 : index
    %c0_158 = arith.constant 0 : index
    %c0_159 = arith.constant 0 : index
    %231 = vector.load %arg2[%c1_157, %c0_158, %c0_159] : memref<2x24x1xf32, #tpu.memory_space<vmem>>, vector<1x24x1xf32>
    %232 = vector.shape_cast %231 : vector<1x24x1xf32> to vector<24x1xf32>
    %233 = vector.extract_strided_slice %232 {offsets = [0, 0], sizes = [4, 1], strides = [1, 1]} : vector<24x1xf32> to vector<4x1xf32>
    %234 = vector.extract_strided_slice %232 {offsets = [4, 0], sizes = [4, 1], strides = [1, 1]} : vector<24x1xf32> to vector<4x1xf32>
    %235 = vector.extract_strided_slice %232 {offsets = [8, 0], sizes = [8, 1], strides = [1, 1]} : vector<24x1xf32> to vector<8x1xf32>
    %236 = vector.extract_strided_slice %232 {offsets = [16, 0], sizes = [8, 1], strides = [1, 1]} : vector<24x1xf32> to vector<8x1xf32>
    %c0_160 = arith.constant 0 : index
    %c0_161 = arith.constant 0 : index
    %237 = vector.load %arg4[%c0_160, %c0_161] : memref<8x4xf32, #tpu.memory_space<vmem>>, vector<8x4xf32>
    %cst_162 = arith.constant dense<0.000000e+00> : vector<8x256xf32>
    %238 = tpu.matmul %237, %230, %cst_162 {dimension_numbers = #tpu.dot_dimension_numbers<[1], [0], [0], [1], [0, 0, 1, 1], [], []>} : vector<8x4xf32>, vector<4x256xf32>, vector<8x256xf32> -> vector<8x256xf32>
    %c0_163 = arith.constant 0 : index
    %c0_164 = arith.constant 0 : index
    %239 = vector.load %arg5[%c0_163, %c0_164] : memref<8x1xf32, #tpu.memory_space<vmem>>, vector<8x1xf32>
    %240 = vector.broadcast %239 : vector<8x1xf32> to vector<8x256xf32>
    %241 = arith.addf %238, %240 : vector<8x256xf32>
    %cst_165 = arith.constant dense<0.000000e+00> : vector<4xf32>
    %242 = vector.multi_reduction <add>, %230, %cst_165 [1] : vector<4x256xf32> to vector<4xf32>
    %243 = vector.shape_cast %242 : vector<4xf32> to vector<4x1xf32>
    %cst_166 = arith.constant 2.560000e+02 : f32
    %244 = vector.broadcast %cst_166 : f32 to vector<4x1xf32>
    %245 = arith.divf %243, %244 : vector<4x1xf32>
    %246 = vector.broadcast %245 : vector<4x1xf32> to vector<4x256xf32>
    %247 = arith.subf %230, %246 : vector<4x256xf32>
    %248 = arith.mulf %247, %247 : vector<4x256xf32>
    %cst_167 = arith.constant dense<0.000000e+00> : vector<4xf32>
    %249 = vector.multi_reduction <add>, %248, %cst_167 [1] : vector<4x256xf32> to vector<4xf32>
    %250 = vector.shape_cast %249 : vector<4xf32> to vector<4x1xf32>
    %cst_168 = arith.constant 2.560000e+02 : f32
    %251 = vector.broadcast %cst_168 : f32 to vector<4x1xf32>
    %252 = arith.divf %250, %251 : vector<4x1xf32>
    %253 = vector.broadcast %245 : vector<4x1xf32> to vector<4x256xf32>
    %254 = arith.subf %230, %253 : vector<4x256xf32>
    %cst_169 = arith.constant 9.99999974E-6 : f32
    %255 = vector.broadcast %cst_169 : f32 to vector<4x1xf32>
    %256 = arith.addf %252, %255 : vector<4x1xf32>
    %257 = math.rsqrt %256 : vector<4x1xf32>
    %258 = vector.broadcast %257 : vector<4x1xf32> to vector<4x256xf32>
    %259 = arith.mulf %254, %258 : vector<4x256xf32>
    %260 = vector.broadcast %234 : vector<4x1xf32> to vector<4x256xf32>
    %261 = arith.mulf %259, %260 : vector<4x256xf32>
    %262 = vector.broadcast %233 : vector<4x1xf32> to vector<4x256xf32>
    %263 = arith.addf %261, %262 : vector<4x256xf32>
    %cst_170 = arith.constant 0.000000e+00 : f32
    %264 = vector.broadcast %cst_170 : f32 to vector<4x256xf32>
    %265 = arith.maximumf %263, %264 : vector<4x256xf32>
    %c17_i32_171 = arith.constant 17 : i32
    %266 = tpu.dynamic_rotate %265 by %c17_i32_171 dim 1 : vector<4x256xf32>, i32 -> vector<4x256xf32>
    %c0_172 = arith.constant 0 : index
    %c0_173 = arith.constant 0 : index
    %c0_174 = arith.constant 0 : index
    %267 = vector.load %arg3[%c0_172, %c0_173, %c0_174] : memref<9x1x256xf32, #tpu.memory_space<vmem>>, vector<1x1x256xf32>
    %268 = vector.shape_cast %267 : vector<1x1x256xf32> to vector<1x256xf32>
    %269 = vector.broadcast %268 : vector<1x256xf32> to vector<4x256xf32>
    %270 = arith.mulf %266, %269 : vector<4x256xf32>
    %c0_175 = arith.constant 0 : index
    %c0_176 = arith.constant 0 : index
    %c0_177 = arith.constant 0 : index
    %271 = vector.load %arg6[%c0_175, %c0_176, %c0_177] : memref<9x8x4xf32, #tpu.memory_space<vmem>>, vector<1x8x4xf32>
    %272 = vector.shape_cast %271 : vector<1x8x4xf32> to vector<8x4xf32>
    %cst_178 = arith.constant dense<0.000000e+00> : vector<8x256xf32>
    %273 = tpu.matmul %272, %270, %cst_178 {dimension_numbers = #tpu.dot_dimension_numbers<[1], [0], [0], [1], [0, 0, 1, 1], [], []>} : vector<8x4xf32>, vector<4x256xf32>, vector<8x256xf32> -> vector<8x256xf32>
    %c16_i32_179 = arith.constant 16 : i32
    %274 = tpu.dynamic_rotate %265 by %c16_i32_179 dim 1 : vector<4x256xf32>, i32 -> vector<4x256xf32>
    %c1_180 = arith.constant 1 : index
    %c0_181 = arith.constant 0 : index
    %c0_182 = arith.constant 0 : index
    %275 = vector.load %arg3[%c1_180, %c0_181, %c0_182] : memref<9x1x256xf32, #tpu.memory_space<vmem>>, vector<1x1x256xf32>
    %276 = vector.shape_cast %275 : vector<1x1x256xf32> to vector<1x256xf32>
    %277 = vector.broadcast %276 : vector<1x256xf32> to vector<4x256xf32>
    %278 = arith.mulf %274, %277 : vector<4x256xf32>
    %c1_183 = arith.constant 1 : index
    %c0_184 = arith.constant 0 : index
    %c0_185 = arith.constant 0 : index
    %279 = vector.load %arg6[%c1_183, %c0_184, %c0_185] : memref<9x8x4xf32, #tpu.memory_space<vmem>>, vector<1x8x4xf32>
    %280 = vector.shape_cast %279 : vector<1x8x4xf32> to vector<8x4xf32>
    %cst_186 = arith.constant dense<0.000000e+00> : vector<8x256xf32>
    %281 = tpu.matmul %280, %278, %cst_186 {dimension_numbers = #tpu.dot_dimension_numbers<[1], [0], [0], [1], [0, 0, 1, 1], [], []>} : vector<8x4xf32>, vector<4x256xf32>, vector<8x256xf32> -> vector<8x256xf32>
    %282 = arith.addf %273, %281 : vector<8x256xf32>
    %c15_i32_187 = arith.constant 15 : i32
    %283 = tpu.dynamic_rotate %265 by %c15_i32_187 dim 1 : vector<4x256xf32>, i32 -> vector<4x256xf32>
    %c2_188 = arith.constant 2 : index
    %c0_189 = arith.constant 0 : index
    %c0_190 = arith.constant 0 : index
    %284 = vector.load %arg3[%c2_188, %c0_189, %c0_190] : memref<9x1x256xf32, #tpu.memory_space<vmem>>, vector<1x1x256xf32>
    %285 = vector.shape_cast %284 : vector<1x1x256xf32> to vector<1x256xf32>
    %286 = vector.broadcast %285 : vector<1x256xf32> to vector<4x256xf32>
    %287 = arith.mulf %283, %286 : vector<4x256xf32>
    %c2_191 = arith.constant 2 : index
    %c0_192 = arith.constant 0 : index
    %c0_193 = arith.constant 0 : index
    %288 = vector.load %arg6[%c2_191, %c0_192, %c0_193] : memref<9x8x4xf32, #tpu.memory_space<vmem>>, vector<1x8x4xf32>
    %289 = vector.shape_cast %288 : vector<1x8x4xf32> to vector<8x4xf32>
    %cst_194 = arith.constant dense<0.000000e+00> : vector<8x256xf32>
    %290 = tpu.matmul %289, %287, %cst_194 {dimension_numbers = #tpu.dot_dimension_numbers<[1], [0], [0], [1], [0, 0, 1, 1], [], []>} : vector<8x4xf32>, vector<4x256xf32>, vector<8x256xf32> -> vector<8x256xf32>
    %291 = arith.addf %282, %290 : vector<8x256xf32>
    %c1_i32_195 = arith.constant 1 : i32
    %292 = tpu.dynamic_rotate %265 by %c1_i32_195 dim 1 : vector<4x256xf32>, i32 -> vector<4x256xf32>
    %c3_196 = arith.constant 3 : index
    %c0_197 = arith.constant 0 : index
    %c0_198 = arith.constant 0 : index
    %293 = vector.load %arg3[%c3_196, %c0_197, %c0_198] : memref<9x1x256xf32, #tpu.memory_space<vmem>>, vector<1x1x256xf32>
    %294 = vector.shape_cast %293 : vector<1x1x256xf32> to vector<1x256xf32>
    %295 = vector.broadcast %294 : vector<1x256xf32> to vector<4x256xf32>
    %296 = arith.mulf %292, %295 : vector<4x256xf32>
    %c3_199 = arith.constant 3 : index
    %c0_200 = arith.constant 0 : index
    %c0_201 = arith.constant 0 : index
    %297 = vector.load %arg6[%c3_199, %c0_200, %c0_201] : memref<9x8x4xf32, #tpu.memory_space<vmem>>, vector<1x8x4xf32>
    %298 = vector.shape_cast %297 : vector<1x8x4xf32> to vector<8x4xf32>
    %cst_202 = arith.constant dense<0.000000e+00> : vector<8x256xf32>
    %299 = tpu.matmul %298, %296, %cst_202 {dimension_numbers = #tpu.dot_dimension_numbers<[1], [0], [0], [1], [0, 0, 1, 1], [], []>} : vector<8x4xf32>, vector<4x256xf32>, vector<8x256xf32> -> vector<8x256xf32>
    %300 = arith.addf %291, %299 : vector<8x256xf32>
    %c4_203 = arith.constant 4 : index
    %c0_204 = arith.constant 0 : index
    %c0_205 = arith.constant 0 : index
    %301 = vector.load %arg3[%c4_203, %c0_204, %c0_205] : memref<9x1x256xf32, #tpu.memory_space<vmem>>, vector<1x1x256xf32>
    %302 = vector.shape_cast %301 : vector<1x1x256xf32> to vector<1x256xf32>
    %303 = vector.broadcast %302 : vector<1x256xf32> to vector<4x256xf32>
    %304 = arith.mulf %265, %303 : vector<4x256xf32>
    %c4_206 = arith.constant 4 : index
    %c0_207 = arith.constant 0 : index
    %c0_208 = arith.constant 0 : index
    %305 = vector.load %arg6[%c4_206, %c0_207, %c0_208] : memref<9x8x4xf32, #tpu.memory_space<vmem>>, vector<1x8x4xf32>
    %306 = vector.shape_cast %305 : vector<1x8x4xf32> to vector<8x4xf32>
    %cst_209 = arith.constant dense<0.000000e+00> : vector<8x256xf32>
    %307 = tpu.matmul %306, %304, %cst_209 {dimension_numbers = #tpu.dot_dimension_numbers<[1], [0], [0], [1], [0, 0, 1, 1], [], []>} : vector<8x4xf32>, vector<4x256xf32>, vector<8x256xf32> -> vector<8x256xf32>
    %308 = arith.addf %300, %307 : vector<8x256xf32>
    %c255_i32_210 = arith.constant 255 : i32
    %309 = tpu.dynamic_rotate %265 by %c255_i32_210 dim 1 : vector<4x256xf32>, i32 -> vector<4x256xf32>
    %c5_211 = arith.constant 5 : index
    %c0_212 = arith.constant 0 : index
    %c0_213 = arith.constant 0 : index
    %310 = vector.load %arg3[%c5_211, %c0_212, %c0_213] : memref<9x1x256xf32, #tpu.memory_space<vmem>>, vector<1x1x256xf32>
    %311 = vector.shape_cast %310 : vector<1x1x256xf32> to vector<1x256xf32>
    %312 = vector.broadcast %311 : vector<1x256xf32> to vector<4x256xf32>
    %313 = arith.mulf %309, %312 : vector<4x256xf32>
    %c5_214 = arith.constant 5 : index
    %c0_215 = arith.constant 0 : index
    %c0_216 = arith.constant 0 : index
    %314 = vector.load %arg6[%c5_214, %c0_215, %c0_216] : memref<9x8x4xf32, #tpu.memory_space<vmem>>, vector<1x8x4xf32>
    %315 = vector.shape_cast %314 : vector<1x8x4xf32> to vector<8x4xf32>
    %cst_217 = arith.constant dense<0.000000e+00> : vector<8x256xf32>
    %316 = tpu.matmul %315, %313, %cst_217 {dimension_numbers = #tpu.dot_dimension_numbers<[1], [0], [0], [1], [0, 0, 1, 1], [], []>} : vector<8x4xf32>, vector<4x256xf32>, vector<8x256xf32> -> vector<8x256xf32>
    %317 = arith.addf %308, %316 : vector<8x256xf32>
    %c241_i32_218 = arith.constant 241 : i32
    %318 = tpu.dynamic_rotate %265 by %c241_i32_218 dim 1 : vector<4x256xf32>, i32 -> vector<4x256xf32>
    %c6_219 = arith.constant 6 : index
    %c0_220 = arith.constant 0 : index
    %c0_221 = arith.constant 0 : index
    %319 = vector.load %arg3[%c6_219, %c0_220, %c0_221] : memref<9x1x256xf32, #tpu.memory_space<vmem>>, vector<1x1x256xf32>
    %320 = vector.shape_cast %319 : vector<1x1x256xf32> to vector<1x256xf32>
    %321 = vector.broadcast %320 : vector<1x256xf32> to vector<4x256xf32>
    %322 = arith.mulf %318, %321 : vector<4x256xf32>
    %c6_222 = arith.constant 6 : index
    %c0_223 = arith.constant 0 : index
    %c0_224 = arith.constant 0 : index
    %323 = vector.load %arg6[%c6_222, %c0_223, %c0_224] : memref<9x8x4xf32, #tpu.memory_space<vmem>>, vector<1x8x4xf32>
    %324 = vector.shape_cast %323 : vector<1x8x4xf32> to vector<8x4xf32>
    %cst_225 = arith.constant dense<0.000000e+00> : vector<8x256xf32>
    %325 = tpu.matmul %324, %322, %cst_225 {dimension_numbers = #tpu.dot_dimension_numbers<[1], [0], [0], [1], [0, 0, 1, 1], [], []>} : vector<8x4xf32>, vector<4x256xf32>, vector<8x256xf32> -> vector<8x256xf32>
    %326 = arith.addf %317, %325 : vector<8x256xf32>
    %c240_i32_226 = arith.constant 240 : i32
    %327 = tpu.dynamic_rotate %265 by %c240_i32_226 dim 1 : vector<4x256xf32>, i32 -> vector<4x256xf32>
    %c7_227 = arith.constant 7 : index
    %c0_228 = arith.constant 0 : index
    %c0_229 = arith.constant 0 : index
    %328 = vector.load %arg3[%c7_227, %c0_228, %c0_229] : memref<9x1x256xf32, #tpu.memory_space<vmem>>, vector<1x1x256xf32>
    %329 = vector.shape_cast %328 : vector<1x1x256xf32> to vector<1x256xf32>
    %330 = vector.broadcast %329 : vector<1x256xf32> to vector<4x256xf32>
    %331 = arith.mulf %327, %330 : vector<4x256xf32>
    %c7_230 = arith.constant 7 : index
    %c0_231 = arith.constant 0 : index
    %c0_232 = arith.constant 0 : index
    %332 = vector.load %arg6[%c7_230, %c0_231, %c0_232] : memref<9x8x4xf32, #tpu.memory_space<vmem>>, vector<1x8x4xf32>
    %333 = vector.shape_cast %332 : vector<1x8x4xf32> to vector<8x4xf32>
    %cst_233 = arith.constant dense<0.000000e+00> : vector<8x256xf32>
    %334 = tpu.matmul %333, %331, %cst_233 {dimension_numbers = #tpu.dot_dimension_numbers<[1], [0], [0], [1], [0, 0, 1, 1], [], []>} : vector<8x4xf32>, vector<4x256xf32>, vector<8x256xf32> -> vector<8x256xf32>
    %335 = arith.addf %326, %334 : vector<8x256xf32>
    %c239_i32_234 = arith.constant 239 : i32
    %336 = tpu.dynamic_rotate %265 by %c239_i32_234 dim 1 : vector<4x256xf32>, i32 -> vector<4x256xf32>
    %c8_235 = arith.constant 8 : index
    %c0_236 = arith.constant 0 : index
    %c0_237 = arith.constant 0 : index
    %337 = vector.load %arg3[%c8_235, %c0_236, %c0_237] : memref<9x1x256xf32, #tpu.memory_space<vmem>>, vector<1x1x256xf32>
    %338 = vector.shape_cast %337 : vector<1x1x256xf32> to vector<1x256xf32>
    %339 = vector.broadcast %338 : vector<1x256xf32> to vector<4x256xf32>
    %340 = arith.mulf %336, %339 : vector<4x256xf32>
    %c8_238 = arith.constant 8 : index
    %c0_239 = arith.constant 0 : index
    %c0_240 = arith.constant 0 : index
    %341 = vector.load %arg6[%c8_238, %c0_239, %c0_240] : memref<9x8x4xf32, #tpu.memory_space<vmem>>, vector<1x8x4xf32>
    %342 = vector.shape_cast %341 : vector<1x8x4xf32> to vector<8x4xf32>
    %cst_241 = arith.constant dense<0.000000e+00> : vector<8x256xf32>
    %343 = tpu.matmul %342, %340, %cst_241 {dimension_numbers = #tpu.dot_dimension_numbers<[1], [0], [0], [1], [0, 0, 1, 1], [], []>} : vector<8x4xf32>, vector<4x256xf32>, vector<8x256xf32> -> vector<8x256xf32>
    %344 = arith.addf %335, %343 : vector<8x256xf32>
    %c0_242 = arith.constant 0 : index
    %c0_243 = arith.constant 0 : index
    %345 = vector.load %arg7[%c0_242, %c0_243] : memref<8x1xf32, #tpu.memory_space<vmem>>, vector<8x1xf32>
    %346 = vector.broadcast %345 : vector<8x1xf32> to vector<8x256xf32>
    %347 = arith.addf %344, %346 : vector<8x256xf32>
    %cst_244 = arith.constant dense<0.000000e+00> : vector<8xf32>
    %348 = vector.multi_reduction <add>, %347, %cst_244 [1] : vector<8x256xf32> to vector<8xf32>
    %349 = vector.shape_cast %348 : vector<8xf32> to vector<8x1xf32>
    %cst_245 = arith.constant 2.560000e+02 : f32
    %350 = vector.broadcast %cst_245 : f32 to vector<8x1xf32>
    %351 = arith.divf %349, %350 : vector<8x1xf32>
    %352 = vector.broadcast %351 : vector<8x1xf32> to vector<8x256xf32>
    %353 = arith.subf %347, %352 : vector<8x256xf32>
    %354 = arith.mulf %353, %353 : vector<8x256xf32>
    %cst_246 = arith.constant dense<0.000000e+00> : vector<8xf32>
    %355 = vector.multi_reduction <add>, %354, %cst_246 [1] : vector<8x256xf32> to vector<8xf32>
    %356 = vector.shape_cast %355 : vector<8xf32> to vector<8x1xf32>
    %cst_247 = arith.constant 2.560000e+02 : f32
    %357 = vector.broadcast %cst_247 : f32 to vector<8x1xf32>
    %358 = arith.divf %356, %357 : vector<8x1xf32>
    %359 = vector.broadcast %351 : vector<8x1xf32> to vector<8x256xf32>
    %360 = arith.subf %347, %359 : vector<8x256xf32>
    %cst_248 = arith.constant 9.99999974E-6 : f32
    %361 = vector.broadcast %cst_248 : f32 to vector<8x1xf32>
    %362 = arith.addf %358, %361 : vector<8x1xf32>
    %363 = math.rsqrt %362 : vector<8x1xf32>
    %364 = vector.broadcast %363 : vector<8x1xf32> to vector<8x256xf32>
    %365 = arith.mulf %360, %364 : vector<8x256xf32>
    %366 = vector.broadcast %236 : vector<8x1xf32> to vector<8x256xf32>
    %367 = arith.mulf %365, %366 : vector<8x256xf32>
    %368 = vector.broadcast %235 : vector<8x1xf32> to vector<8x256xf32>
    %369 = arith.addf %367, %368 : vector<8x256xf32>
    %cst_249 = arith.constant 0.000000e+00 : f32
    %370 = vector.broadcast %cst_249 : f32 to vector<8x256xf32>
    %371 = arith.maximumf %369, %370 : vector<8x256xf32>
    %c17_i32_250 = arith.constant 17 : i32
    %372 = tpu.dynamic_rotate %371 by %c17_i32_250 dim 1 : vector<8x256xf32>, i32 -> vector<8x256xf32>
    %c0_251 = arith.constant 0 : index
    %c0_252 = arith.constant 0 : index
    %c0_253 = arith.constant 0 : index
    %373 = vector.load %arg3[%c0_251, %c0_252, %c0_253] : memref<9x1x256xf32, #tpu.memory_space<vmem>>, vector<1x1x256xf32>
    %374 = vector.shape_cast %373 : vector<1x1x256xf32> to vector<1x256xf32>
    %375 = vector.broadcast %374 : vector<1x256xf32> to vector<8x256xf32>
    %376 = arith.mulf %372, %375 : vector<8x256xf32>
    %c0_254 = arith.constant 0 : index
    %c0_255 = arith.constant 0 : index
    %c0_256 = arith.constant 0 : index
    %377 = vector.load %arg8[%c0_254, %c0_255, %c0_256] : memref<9x8x8xf32, #tpu.memory_space<vmem>>, vector<1x8x8xf32>
    %378 = vector.shape_cast %377 : vector<1x8x8xf32> to vector<8x8xf32>
    %cst_257 = arith.constant dense<0.000000e+00> : vector<8x256xf32>
    %379 = tpu.matmul %378, %376, %cst_257 {dimension_numbers = #tpu.dot_dimension_numbers<[1], [0], [0], [1], [0, 0, 1, 1], [], []>} : vector<8x8xf32>, vector<8x256xf32>, vector<8x256xf32> -> vector<8x256xf32>
    %c16_i32_258 = arith.constant 16 : i32
    %380 = tpu.dynamic_rotate %371 by %c16_i32_258 dim 1 : vector<8x256xf32>, i32 -> vector<8x256xf32>
    %c1_259 = arith.constant 1 : index
    %c0_260 = arith.constant 0 : index
    %c0_261 = arith.constant 0 : index
    %381 = vector.load %arg3[%c1_259, %c0_260, %c0_261] : memref<9x1x256xf32, #tpu.memory_space<vmem>>, vector<1x1x256xf32>
    %382 = vector.shape_cast %381 : vector<1x1x256xf32> to vector<1x256xf32>
    %383 = vector.broadcast %382 : vector<1x256xf32> to vector<8x256xf32>
    %384 = arith.mulf %380, %383 : vector<8x256xf32>
    %c1_262 = arith.constant 1 : index
    %c0_263 = arith.constant 0 : index
    %c0_264 = arith.constant 0 : index
    %385 = vector.load %arg8[%c1_262, %c0_263, %c0_264] : memref<9x8x8xf32, #tpu.memory_space<vmem>>, vector<1x8x8xf32>
    %386 = vector.shape_cast %385 : vector<1x8x8xf32> to vector<8x8xf32>
    %cst_265 = arith.constant dense<0.000000e+00> : vector<8x256xf32>
    %387 = tpu.matmul %386, %384, %cst_265 {dimension_numbers = #tpu.dot_dimension_numbers<[1], [0], [0], [1], [0, 0, 1, 1], [], []>} : vector<8x8xf32>, vector<8x256xf32>, vector<8x256xf32> -> vector<8x256xf32>
    %388 = arith.addf %379, %387 : vector<8x256xf32>
    %c15_i32_266 = arith.constant 15 : i32
    %389 = tpu.dynamic_rotate %371 by %c15_i32_266 dim 1 : vector<8x256xf32>, i32 -> vector<8x256xf32>
    %c2_267 = arith.constant 2 : index
    %c0_268 = arith.constant 0 : index
    %c0_269 = arith.constant 0 : index
    %390 = vector.load %arg3[%c2_267, %c0_268, %c0_269] : memref<9x1x256xf32, #tpu.memory_space<vmem>>, vector<1x1x256xf32>
    %391 = vector.shape_cast %390 : vector<1x1x256xf32> to vector<1x256xf32>
    %392 = vector.broadcast %391 : vector<1x256xf32> to vector<8x256xf32>
    %393 = arith.mulf %389, %392 : vector<8x256xf32>
    %c2_270 = arith.constant 2 : index
    %c0_271 = arith.constant 0 : index
    %c0_272 = arith.constant 0 : index
    %394 = vector.load %arg8[%c2_270, %c0_271, %c0_272] : memref<9x8x8xf32, #tpu.memory_space<vmem>>, vector<1x8x8xf32>
    %395 = vector.shape_cast %394 : vector<1x8x8xf32> to vector<8x8xf32>
    %cst_273 = arith.constant dense<0.000000e+00> : vector<8x256xf32>
    %396 = tpu.matmul %395, %393, %cst_273 {dimension_numbers = #tpu.dot_dimension_numbers<[1], [0], [0], [1], [0, 0, 1, 1], [], []>} : vector<8x8xf32>, vector<8x256xf32>, vector<8x256xf32> -> vector<8x256xf32>
    %397 = arith.addf %388, %396 : vector<8x256xf32>
    %c1_i32_274 = arith.constant 1 : i32
    %398 = tpu.dynamic_rotate %371 by %c1_i32_274 dim 1 : vector<8x256xf32>, i32 -> vector<8x256xf32>
    %c3_275 = arith.constant 3 : index
    %c0_276 = arith.constant 0 : index
    %c0_277 = arith.constant 0 : index
    %399 = vector.load %arg3[%c3_275, %c0_276, %c0_277] : memref<9x1x256xf32, #tpu.memory_space<vmem>>, vector<1x1x256xf32>
    %400 = vector.shape_cast %399 : vector<1x1x256xf32> to vector<1x256xf32>
    %401 = vector.broadcast %400 : vector<1x256xf32> to vector<8x256xf32>
    %402 = arith.mulf %398, %401 : vector<8x256xf32>
    %c3_278 = arith.constant 3 : index
    %c0_279 = arith.constant 0 : index
    %c0_280 = arith.constant 0 : index
    %403 = vector.load %arg8[%c3_278, %c0_279, %c0_280] : memref<9x8x8xf32, #tpu.memory_space<vmem>>, vector<1x8x8xf32>
    %404 = vector.shape_cast %403 : vector<1x8x8xf32> to vector<8x8xf32>
    %cst_281 = arith.constant dense<0.000000e+00> : vector<8x256xf32>
    %405 = tpu.matmul %404, %402, %cst_281 {dimension_numbers = #tpu.dot_dimension_numbers<[1], [0], [0], [1], [0, 0, 1, 1], [], []>} : vector<8x8xf32>, vector<8x256xf32>, vector<8x256xf32> -> vector<8x256xf32>
    %406 = arith.addf %397, %405 : vector<8x256xf32>
    %c4_282 = arith.constant 4 : index
    %c0_283 = arith.constant 0 : index
    %c0_284 = arith.constant 0 : index
    %407 = vector.load %arg3[%c4_282, %c0_283, %c0_284] : memref<9x1x256xf32, #tpu.memory_space<vmem>>, vector<1x1x256xf32>
    %408 = vector.shape_cast %407 : vector<1x1x256xf32> to vector<1x256xf32>
    %409 = vector.broadcast %408 : vector<1x256xf32> to vector<8x256xf32>
    %410 = arith.mulf %371, %409 : vector<8x256xf32>
    %c4_285 = arith.constant 4 : index
    %c0_286 = arith.constant 0 : index
    %c0_287 = arith.constant 0 : index
    %411 = vector.load %arg8[%c4_285, %c0_286, %c0_287] : memref<9x8x8xf32, #tpu.memory_space<vmem>>, vector<1x8x8xf32>
    %412 = vector.shape_cast %411 : vector<1x8x8xf32> to vector<8x8xf32>
    %cst_288 = arith.constant dense<0.000000e+00> : vector<8x256xf32>
    %413 = tpu.matmul %412, %410, %cst_288 {dimension_numbers = #tpu.dot_dimension_numbers<[1], [0], [0], [1], [0, 0, 1, 1], [], []>} : vector<8x8xf32>, vector<8x256xf32>, vector<8x256xf32> -> vector<8x256xf32>
    %414 = arith.addf %406, %413 : vector<8x256xf32>
    %c255_i32_289 = arith.constant 255 : i32
    %415 = tpu.dynamic_rotate %371 by %c255_i32_289 dim 1 : vector<8x256xf32>, i32 -> vector<8x256xf32>
    %c5_290 = arith.constant 5 : index
    %c0_291 = arith.constant 0 : index
    %c0_292 = arith.constant 0 : index
    %416 = vector.load %arg3[%c5_290, %c0_291, %c0_292] : memref<9x1x256xf32, #tpu.memory_space<vmem>>, vector<1x1x256xf32>
    %417 = vector.shape_cast %416 : vector<1x1x256xf32> to vector<1x256xf32>
    %418 = vector.broadcast %417 : vector<1x256xf32> to vector<8x256xf32>
    %419 = arith.mulf %415, %418 : vector<8x256xf32>
    %c5_293 = arith.constant 5 : index
    %c0_294 = arith.constant 0 : index
    %c0_295 = arith.constant 0 : index
    %420 = vector.load %arg8[%c5_293, %c0_294, %c0_295] : memref<9x8x8xf32, #tpu.memory_space<vmem>>, vector<1x8x8xf32>
    %421 = vector.shape_cast %420 : vector<1x8x8xf32> to vector<8x8xf32>
    %cst_296 = arith.constant dense<0.000000e+00> : vector<8x256xf32>
    %422 = tpu.matmul %421, %419, %cst_296 {dimension_numbers = #tpu.dot_dimension_numbers<[1], [0], [0], [1], [0, 0, 1, 1], [], []>} : vector<8x8xf32>, vector<8x256xf32>, vector<8x256xf32> -> vector<8x256xf32>
    %423 = arith.addf %414, %422 : vector<8x256xf32>
    %c241_i32_297 = arith.constant 241 : i32
    %424 = tpu.dynamic_rotate %371 by %c241_i32_297 dim 1 : vector<8x256xf32>, i32 -> vector<8x256xf32>
    %c6_298 = arith.constant 6 : index
    %c0_299 = arith.constant 0 : index
    %c0_300 = arith.constant 0 : index
    %425 = vector.load %arg3[%c6_298, %c0_299, %c0_300] : memref<9x1x256xf32, #tpu.memory_space<vmem>>, vector<1x1x256xf32>
    %426 = vector.shape_cast %425 : vector<1x1x256xf32> to vector<1x256xf32>
    %427 = vector.broadcast %426 : vector<1x256xf32> to vector<8x256xf32>
    %428 = arith.mulf %424, %427 : vector<8x256xf32>
    %c6_301 = arith.constant 6 : index
    %c0_302 = arith.constant 0 : index
    %c0_303 = arith.constant 0 : index
    %429 = vector.load %arg8[%c6_301, %c0_302, %c0_303] : memref<9x8x8xf32, #tpu.memory_space<vmem>>, vector<1x8x8xf32>
    %430 = vector.shape_cast %429 : vector<1x8x8xf32> to vector<8x8xf32>
    %cst_304 = arith.constant dense<0.000000e+00> : vector<8x256xf32>
    %431 = tpu.matmul %430, %428, %cst_304 {dimension_numbers = #tpu.dot_dimension_numbers<[1], [0], [0], [1], [0, 0, 1, 1], [], []>} : vector<8x8xf32>, vector<8x256xf32>, vector<8x256xf32> -> vector<8x256xf32>
    %432 = arith.addf %423, %431 : vector<8x256xf32>
    %c240_i32_305 = arith.constant 240 : i32
    %433 = tpu.dynamic_rotate %371 by %c240_i32_305 dim 1 : vector<8x256xf32>, i32 -> vector<8x256xf32>
    %c7_306 = arith.constant 7 : index
    %c0_307 = arith.constant 0 : index
    %c0_308 = arith.constant 0 : index
    %434 = vector.load %arg3[%c7_306, %c0_307, %c0_308] : memref<9x1x256xf32, #tpu.memory_space<vmem>>, vector<1x1x256xf32>
    %435 = vector.shape_cast %434 : vector<1x1x256xf32> to vector<1x256xf32>
    %436 = vector.broadcast %435 : vector<1x256xf32> to vector<8x256xf32>
    %437 = arith.mulf %433, %436 : vector<8x256xf32>
    %c7_309 = arith.constant 7 : index
    %c0_310 = arith.constant 0 : index
    %c0_311 = arith.constant 0 : index
    %438 = vector.load %arg8[%c7_309, %c0_310, %c0_311] : memref<9x8x8xf32, #tpu.memory_space<vmem>>, vector<1x8x8xf32>
    %439 = vector.shape_cast %438 : vector<1x8x8xf32> to vector<8x8xf32>
    %cst_312 = arith.constant dense<0.000000e+00> : vector<8x256xf32>
    %440 = tpu.matmul %439, %437, %cst_312 {dimension_numbers = #tpu.dot_dimension_numbers<[1], [0], [0], [1], [0, 0, 1, 1], [], []>} : vector<8x8xf32>, vector<8x256xf32>, vector<8x256xf32> -> vector<8x256xf32>
    %441 = arith.addf %432, %440 : vector<8x256xf32>
    %c239_i32_313 = arith.constant 239 : i32
    %442 = tpu.dynamic_rotate %371 by %c239_i32_313 dim 1 : vector<8x256xf32>, i32 -> vector<8x256xf32>
    %c8_314 = arith.constant 8 : index
    %c0_315 = arith.constant 0 : index
    %c0_316 = arith.constant 0 : index
    %443 = vector.load %arg3[%c8_314, %c0_315, %c0_316] : memref<9x1x256xf32, #tpu.memory_space<vmem>>, vector<1x1x256xf32>
    %444 = vector.shape_cast %443 : vector<1x1x256xf32> to vector<1x256xf32>
    %445 = vector.broadcast %444 : vector<1x256xf32> to vector<8x256xf32>
    %446 = arith.mulf %442, %445 : vector<8x256xf32>
    %c8_317 = arith.constant 8 : index
    %c0_318 = arith.constant 0 : index
    %c0_319 = arith.constant 0 : index
    %447 = vector.load %arg8[%c8_317, %c0_318, %c0_319] : memref<9x8x8xf32, #tpu.memory_space<vmem>>, vector<1x8x8xf32>
    %448 = vector.shape_cast %447 : vector<1x8x8xf32> to vector<8x8xf32>
    %cst_320 = arith.constant dense<0.000000e+00> : vector<8x256xf32>
    %449 = tpu.matmul %448, %446, %cst_320 {dimension_numbers = #tpu.dot_dimension_numbers<[1], [0], [0], [1], [0, 0, 1, 1], [], []>} : vector<8x8xf32>, vector<8x256xf32>, vector<8x256xf32> -> vector<8x256xf32>
    %450 = arith.addf %441, %449 : vector<8x256xf32>
    %c0_321 = arith.constant 0 : index
    %c0_322 = arith.constant 0 : index
    %451 = vector.load %arg9[%c0_321, %c0_322] : memref<8x1xf32, #tpu.memory_space<vmem>>, vector<8x1xf32>
    %452 = vector.broadcast %451 : vector<8x1xf32> to vector<8x256xf32>
    %453 = arith.addf %450, %452 : vector<8x256xf32>
    %454 = arith.addf %453, %241 : vector<8x256xf32>
    %c1_323 = arith.constant 1 : index
    %c0_324 = arith.constant 0 : index
    %c0_325 = arith.constant 0 : index
    %455 = vector.load %arg10[%c1_323, %c0_324, %c0_325] : memref<2x8x256xf32, #tpu.memory_space<vmem>>, vector<1x8x256xf32>
    %456 = vector.shape_cast %455 : vector<1x8x256xf32> to vector<8x256xf32>
    %457 = vector.shape_cast %454 : vector<8x256xf32> to vector<1x8x256xf32>
    tpu.vector_store %arg10[%c1_323, %c0_324, %c0_325], %457 {strides = array<i32>} : memref<2x8x256xf32, #tpu.memory_space<vmem>>, vector<1x8x256xf32>,
    return
  }
  func.func @transform_0(%arg0: i32) -> (i32, i32, i32) {
    %c0_i32 = arith.constant 0 : i32
    %c0_i32_0 = arith.constant 0 : i32
    %c0_i32_1 = arith.constant 0 : i32
    return %arg0, %c0_i32, %c0_i32_0 : i32, i32, i32
  }
  func.func @transform_1(%arg0: i32) -> (i32, i32, i32) {
    %c0_i32 = arith.constant 0 : i32
    %c0_i32_0 = arith.constant 0 : i32
    %c0_i32_1 = arith.constant 0 : i32
    return %arg0, %c0_i32, %c0_i32_0 : i32, i32, i32
  }
  func.func @transform_2(%arg0: i32) -> (i32, i32, i32) {
    %c0_i32 = arith.constant 0 : i32
    %c0_i32_0 = arith.constant 0 : i32
    %c0_i32_1 = arith.constant 0 : i32
    %c0_i32_2 = arith.constant 0 : i32
    return %c0_i32, %c0_i32_0, %c0_i32_1 : i32, i32, i32
  }
  func.func @transform_3(%arg0: i32) -> (i32, i32) {
    %c0_i32 = arith.constant 0 : i32
    %c0_i32_0 = arith.constant 0 : i32
    %c0_i32_1 = arith.constant 0 : i32
    return %c0_i32, %c0_i32_0 : i32, i32
  }
  func.func @transform_4(%arg0: i32) -> (i32, i32) {
    %c0_i32 = arith.constant 0 : i32
    %c0_i32_0 = arith.constant 0 : i32
    %c0_i32_1 = arith.constant 0 : i32
    return %c0_i32, %c0_i32_0 : i32, i32
  }
  func.func @transform_5(%arg0: i32) -> (i32, i32, i32) {
    %c0_i32 = arith.constant 0 : i32
    %c0_i32_0 = arith.constant 0 : i32
    %c0_i32_1 = arith.constant 0 : i32
    %c0_i32_2 = arith.constant 0 : i32
    return %c0_i32, %c0_i32_0, %c0_i32_1 : i32, i32, i32
  }
  func.func @transform_6(%arg0: i32) -> (i32, i32) {
    %c0_i32 = arith.constant 0 : i32
    %c0_i32_0 = arith.constant 0 : i32
    %c0_i32_1 = arith.constant 0 : i32
    return %c0_i32, %c0_i32_0 : i32, i32
  }
  func.func @transform_7(%arg0: i32) -> (i32, i32, i32) {
    %c0_i32 = arith.constant 0 : i32
    %c0_i32_0 = arith.constant 0 : i32
    %c0_i32_1 = arith.constant 0 : i32
    %c0_i32_2 = arith.constant 0 : i32
    return %c0_i32, %c0_i32_0, %c0_i32_1 : i32, i32, i32
  }
  func.func @transform_8(%arg0: i32) -> (i32, i32) {
    %c0_i32 = arith.constant 0 : i32
    %c0_i32_0 = arith.constant 0 : i32
    %c0_i32_1 = arith.constant 0 : i32
    return %c0_i32, %c0_i32_0 : i32, i32
  }
  func.func @transform_9(%arg0: i32) -> (i32, i32, i32) {
    %c0_i32 = arith.constant 0 : i32
    %c0_i32_0 = arith.constant 0 : i32
    %c0_i32_1 = arith.constant 0 : i32
    return %arg0, %c0_i32, %c0_i32_0 : i32, i32, i32
  }
}

</mosaic_0001>

<bundles_post_ra>
// kernel: tpu_custom_call.1
= control target key start
LH: loop header
LB: loop body
LE: loop exit
PB: predicated region body
PF: predicated region fallthrough
CT: control target
= control target key end

     0   :  { %s3908_s0 = inlined_call_operand.vmem [shape: f32[2,4,256], index: 0, kind: input, shape index: {}]   ;;  %s3909_s1 = inlined_call_operand.vmem [shape: f32[2,24,1], index: 1, kind: input, shape index: {}]   ;;  %s3910_s2 = inlined_call_operand.vmem [shape: f32[9,1,256], index: 2, kind: input, shape index: {}]   ;;  %s3911_s3 = inlined_call_operand.vmem [shape: f32[8,4], index: 3, kind: input, shape index: {}]   ;;  %s3912_s4 = inlined_call_operand.vmem [shape: f32[8,1], index: 4, kind: input, shape index: {}]   ;;  %s3913_s5 = inlined_call_operand.vmem [shape: f32[9,8,4], index: 5, kind: input, shape index: {}]   ;;  %s3914_s6 = inlined_call_operand.vmem [shape: f32[8,1], index: 6, kind: input, shape index: {}]   ;;  %s3915_s7 = inlined_call_operand.vmem [shape: f32[9,8,8], index: 7, kind: input, shape index: {}]   ;;  %s3916_s8 = inlined_call_operand.vmem [shape: f32[8,1], index: 8, kind: input, shape index: {}]   ;;  %s3917_s9 = inlined_call_operand.hbm [shape: f32[2,8,256], index: 9, kind: output, shape index: {}]  }
   0x1   :  { %v33_v0 = vld [vmem:[%s3908_s0] sm:$0xff] }
   0x2   :  { %45 = vst [vmem:[#allocation1] ss:$2 sm:$0xff] %v33_v0 }
   0x3   :  { %14 = vsyncpa [#allocation3], 0  ;;  %vm52_vm0 = vcmask 1043456   ;;  %v2907_v8 = vmov 256.0   ;;  %v34_v12 = vld [vmem:[%s3909_s1] sm:$0xff]  ;;  %v2908_v13 = vmov 0  }
   0x4   :  { %2871 = vrcp.f32 %v2907_v8  ;;  %2868 = vset.pattern.permute.xlu1 %v2908_v13  ;;  %2869 = vset.pattern.permute.xlu0 %v2908_v13  ;;  %v2909_v16 = vmov 839922192   ;;  %v2910_v36 = vmov 1985246804   ;;  %v3000_v53 = vld [vmem:[%s3910_s2 + $0x8] sm:$0x3] }
   0x5   :  { %155 = vperm.xlu1 %2868, %v34_v12   ;;  %2870 = vset.pattern.permute.xlu2 %v2908_v13  ;;  %v117_v17 = vunpack.c.l.s4 %v2909_v16  ;;  %v2990_v37 = vunpack.c.l.s4 %v2910_v36  ;;  %s2911_s15 = smov 16   ;;  %v3928_v56 = vperm.slane %v3000_v53, 1  ;;  %v3929_v57 = vperm.slane %v3000_v53, 0  ;;  %s2912_s16 = smov 17   ;;  %v3082_v36 = vld [vmem:[%s3910_s2 + $0x4] sm:$0x3] }
   0x6   :  { %s2913_s17 = smov 15   ;;  %s2914_s18 = smov 1   ;;  %vm48_vm5 = vcmask 31744  }
   0x7   :  { %v2983_v19 = vunpack.c.0.s8 %v117_v17  ;;  %v159_v40 = vunpack.c.0.s8 %v2990_v37  ;;  %v468_v58 = vrot.slane %v3928_v56, 4  ;;  %s2915_s19 = smov 127   ;;  %s2916_s20 = smov 113  }
   0x8   :  { %s2917_s23 = smov 112   ;;  %s2918_s24 = smov 111  }
   0x9   :  { %v46_v1 = vld.sshfl [vmem:[#allocation1] sm:$0xff pattern:$0x75316420]  ;;  %v47_v2 = vld.sshfl [vmem:[#allocation1 + $0x8] sm:$0xff pattern:$0x75316420]  ;;  %v469_v61 = vsel %vm52_vm0, %v3929_v57, %v468_v58 }
   0xa   :  { %97 = vst [vmem:[#allocation1] ss:$2 sm:$0xff] %v33_v0  ;;  %2686 = vmatpush.msk.msra.mxu0 %vm52_vm0, %v46_v1  ;;  %2688 = vmatpush.msk.msra.mxu1 %vm52_vm0, %v47_v2  ;;  %v2872_v9 = vpop.eup %2871  ;;  %v3118_v58 = vld [vmem:[%s3910_s2 + $0x6] sm:$0x3] }
   0xb   :  { %v108_v10 = vmul.f32 256.0, %v2872_v9  ;;  %vm112_vm1 = vweird.f32 %v2872_v9 }
   0xd   :  { %v109_v11 = vsub.f32 1.0, %v108_v10 }
   0xf   :  { %v110_v14 = vmul.f32 %v2872_v9, %v109_v11 }
  0x11   :  { %v98_v3 = vld.sshfl [vmem:[#allocation1] sm:$0xff pattern:$0x75316420]  ;;  %v99_v4 = vld.sshfl [vmem:[#allocation1 + $0x8] sm:$0xff pattern:$0x75316420]  ;;  %v111_v15 = vadd.f32 %v2872_v9, %v110_v14 }
  0x12   :  { %v102_v5 = vsel %vm52_vm0, %v98_v3, 0.0  ;;  %v103_v6 = vsel %vm52_vm0, %v99_v4, 0.0 }
  0x13   :  { %v104_v7 = vadd.f32 %v103_v6, %v102_v5  ;;  %v2981_v18 = vsel %vm112_vm1, %v2872_v9, %v111_v15  ;;  %v3028_v9 = vld [vmem:[%s3908_s0 + $0x8] sm:$0xff] }
  0x15   :  { %105 = vadd.xlane.f32.xlu0 %v104_v7 }
  0x77   :  { %v156_v42 = vpop.permute.xlu1 %155 }
  0x78   :  { %v160_v45 = vperm.slane %v156_v42, %v159_v40  ;;  %v166_v48 = vperm.slane %v156_v42, %v2983_v19  ;;  %v3935_v42 = vperm.slane %v3082_v36, 0 }
  0x88   :  { %v106_v20 = vpop.xlane.xlu0 %105 }
  0x89   :  { %v114_v21 = vmul.f32 %v2981_v18, %v106_v20 }
  0x8b   :  { %v119_v22 = vperm.slane %v114_v21, %v2983_v19 }
  0x8d   :  { %v121_v23 = vsub.f32 %v33_v0, %v119_v22  ;;  %v3045_v22 = vld [vmem:[%s3911_s3] sm:$0xff] }
  0x8e   :  { %2687 = vmatmul.msk.f32.vlgmr.msra.gmra.mxu0 %vm48_vm5, %v3045_v22  ;;  %2689 = vmatmul.msk.f32.vlgmr.msra.gmra.mxu1 %vm48_vm5, %v3045_v22 }
  0x8f   :  { %v122_v24 = vmul.f32 %v121_v23, %v121_v23 }
  0x91   :  { %124 = vst [vmem:[#allocation1] ss:$2 sm:$0xff] %v122_v24 }
  0x98   :  { %v125_v25 = vld.sshfl [vmem:[#allocation1] sm:$0xff pattern:$0x75316420]  ;;  %v126_v26 = vld.sshfl [vmem:[#allocation1 + $0x8] sm:$0xff pattern:$0x75316420] }
  0x99   :  { %v129_v27 = vsel %vm52_vm0, %v125_v25, 0.0  ;;  %v130_v28 = vsel %vm52_vm0, %v126_v26, 0.0  ;;  %v3056_v25 = vld [vmem:[%s3910_s2 + $0x2] sm:$0x3] }
  0x9a   :  { %v131_v29 = vadd.f32 %v130_v28, %v129_v27  ;;  %v3933_v27 = vperm.slane %v3056_v25, 0  ;;  %v3932_v28 = vperm.slane %v3056_v25, 1 }
  0x9c   :  { %132 = vadd.xlane.f32.xlu0 %v131_v29 }
 0x10f   :  { %v133_v30 = vpop.xlane.xlu0 %132 }
 0x110   :  { %v134_v31 = vmul.f32 %v133_v30, %v2981_v18 }
 0x112   :  { %v135_v32 = vadd.f32 1e-05, %v134_v31 }
 0x114   :  { %2873 = vrsqrt.f32 %v135_v32  ;;  %vm142_vm3 = vweird.f32 %v135_v32 }
 0x11a   :  { %v2874_v33 = vpop.eup %2873 }
 0x11b   :  { %v137_v34 = vmul.f32 %v2874_v33, %v135_v32  ;;  %vm143_vm2 = vweird.f32 %v2874_v33 }
 0x11c   :  { %vm144_vm4 = vmor %vm142_vm3, %vm143_vm2 }
 0x11d   :  { %v138_v35 = vmul.f32 %v2874_v33, %v137_v34  ;;  %v3072_v34 = vld [vmem:[%s3910_s2] sm:$0x3] }
 0x11f   :  { %v139_v38 = vmul.f32 0.5, %v138_v35  ;;  %v3077_v35 = vld [vmem:[%s3913_s5 + $0x8] sm:$0xff] }
 0x121   :  { %v140_v39 = vsub.f32 1.5, %v139_v38  ;;  %v187_v38 = vperm.slane %v3072_v34, 0 }
 0x123   :  { %v141_v41 = vmul.f32 %v2874_v33, %v140_v39 }
 0x125   :  { %v145_v43 = vsel %vm144_vm4, %v2874_v33, %v141_v41  ;;  %v3936_v41 = vperm.slane %v3072_v34, 1 }
 0x126   :  { %v150_v44 = vperm.slane %v145_v43, %v2983_v19  ;;  %v3934_v43 = vperm.slane %v3082_v36, 1 }
 0x128   :  { %v152_v46 = vmul.f32 %v150_v44, %v121_v23  ;;  %v180_v23 = vlaneseq  ;;  %v2769_v44 = vld [vmem:[%s3909_s1 + $0x18] sm:$0xff] }
 0x12a   :  { %v162_v47 = vmul.f32 %v160_v45, %v152_v46  ;;  %v3051_v24 = vand.u32 127, %v180_v23  ;;  %v3202_v23 = vld [vmem:[%s3913_s5 + $0x30] sm:$0xff] }
 0x12c   :  { %v168_v49 = vadd.f32 %v166_v48, %v162_v47  ;;  %vm203_vm6 = vcmp.lt.s32.totalorder %v3051_v24, 16  ;;  %vm182_vm7 = vcmp.lt.s32.totalorder %v3051_v24, 17  ;;  %vm324_vm8 = vcmp.lt.s32.totalorder %v3051_v24, 15 }
 0x12d   :  { %vm398_vm9 = vcmp.lt.s32.totalorder %v3051_v24, 1  ;;  %vm610_vm10 = vcmp.lt.s32.totalorder %v3051_v24, 113  ;;  %vm536_vm11 = vcmp.lt.s32.totalorder %v3051_v24, 127  ;;  %vm684_vm12 = vcmp.lt.s32.totalorder %v3051_v24, 112 }
 0x12e   :  { %v169_v50 = vmax.f32 %v168_v49, 0.0  ;;  %vm758_vm13 = vcmp.lt.s32.totalorder %v3051_v24, 111 }
 0x130   :  { %171 = vst [vmem:[#allocation1] ss:$2 sm:$0xff] %v169_v50  ;;  %v471_v62 = vmul.f32 %v469_v61, %v169_v50  ;;  %v3927_v61 = vperm.slane %v3118_v58, 0 }
 0x137   :  { %v172_v51 = vld.sshfl [vmem:[#allocation1] sm:$0xff pattern:$0x75316420]  ;;  %v173_v52 = vld.sshfl [vmem:[#allocation1 + $0x8] sm:$0xff pattern:$0x75316420] }
 0x138   :  { %194 = vst [vmem:[#allocation1] ss:$2 sm:$0xff] %v169_v50 }
 0x13f   :  { %v195_v54 = vld.sshfl [vmem:[#allocation1] sm:$0xff pattern:$0x75316420]  ;;  %v196_v55 = vld.sshfl [vmem:[#allocation1 + $0x8] sm:$0xff pattern:$0x75316420] }
 0x140   :  { %315 = vst [vmem:[#allocation1] ss:$2 sm:$0xff] %v169_v50  ;;  %201 = vrot.lane.b32.xlu2 %v196_v55, %s2911_s15  ;;  %199 = vrot.lane.b32.xlu1 %v195_v54, %s2911_s15 }
 0x147   :  { %v317_v59 = vld.sshfl [vmem:[#allocation1 + $0x8] sm:$0xff pattern:$0x75316420]  ;;  %v316_v60 = vld.sshfl [vmem:[#allocation1] sm:$0xff pattern:$0x75316420] }
 0x148   :  { %176 = vrot.lane.b32.xlu1 %v172_v51, %s2912_s16  ;;  %322 = vrot.lane.b32.xlu0 %v317_v59, %s2913_s17  ;;  %389 = vst [vmem:[#allocation1] ss:$2 sm:$0xff] %v169_v50  ;;  %v3125_v59 = vld [vmem:[%s3913_s5 + $0x10] sm:$0xff] }
 0x149   :  { %320 = vrot.lane.b32.xlu2 %v316_v60, %s2913_s17  ;;  %v3132_v60 = vld [vmem:[%s3913_s5] sm:$0xff] }
 0x14f   :  { %v390_v63 = vld.sshfl [vmem:[#allocation1] sm:$0xff pattern:$0x75316420]  ;;  %v391_v0 = vld.sshfl [vmem:[#allocation1 + $0x8] sm:$0xff pattern:$0x75316420] }
 0x150   :  { %394 = vrot.lane.b32.xlu1 %v390_v63, %s2914_s18  ;;  %475 = vst [vmem:[#allocation1] ss:$2 sm:$0xff] %v471_v62  ;;  %v3926_v62 = vperm.slane %v3118_v58, 1 }
 0x151   :  { %178 = vrot.lane.b32.xlu2 %v173_v52, %s2912_s16 }
 0x157   :  { %v3016_v1 = vld.sshfl [vmem:[#allocation1] sm:$0xff pattern:$0x75316420]  ;;  %v3018_v2 = vld.sshfl [vmem:[#allocation1 + $0x8] sm:$0xff pattern:$0x75316420] }
 0x158   :  { %527 = vst [vmem:[#allocation1] ss:$2 sm:$0xff] %v169_v50 }
 0x159   :  { %396 = vrot.lane.b32.xlu2 %v391_v0, %s2914_s18 }
 0x15f   :  { %v528_v3 = vld.sshfl [vmem:[#allocation1] sm:$0xff pattern:$0x75316420]  ;;  %v529_v4 = vld.sshfl [vmem:[#allocation1 + $0x8] sm:$0xff pattern:$0x75316420] }
 0x160   :  { %532 = vrot.lane.b32.xlu0 %v528_v3, %s2915_s19  ;;  %601 = vst [vmem:[#allocation1] ss:$2 sm:$0xff] %v169_v50 }
 0x167   :  { %v603_v5 = vld.sshfl [vmem:[#allocation1 + $0x8] sm:$0xff pattern:$0x75316420]  ;;  %v602_v6 = vld.sshfl [vmem:[#allocation1] sm:$0xff pattern:$0x75316420] }
 0x168   :  { %608 = vrot.lane.b32.xlu2 %v603_v5, %s2916_s20  ;;  %606 = vrot.lane.b32.xlu1 %v602_v6, %s2916_s20  ;;  %675 = vst [vmem:[#allocation1] ss:$2 sm:$0xff] %v169_v50  ;;  %v3162_v5 = vld [vmem:[%s3913_s5 + $0x20] sm:$0xff]  ;;  %v3167_v6 = vld [vmem:[%s3913_s5 + $0x18] sm:$0xff] }
 0x16f   :  { %v676_v7 = vld.sshfl [vmem:[#allocation1] sm:$0xff pattern:$0x75316420]  ;;  %v677_v8 = vld.sshfl [vmem:[#allocation1 + $0x8] sm:$0xff pattern:$0x75316420] }
 0x170   :  { %534 = vrot.lane.b32.xlu1 %v529_v4, %s2915_s19  ;;  %749 = vst [vmem:[#allocation1] ss:$2 sm:$0xff] %v169_v50 }
 0x177   :  { %v751_v10 = vld.sshfl [vmem:[#allocation1 + $0x8] sm:$0xff pattern:$0x75316420]  ;;  %v750_v11 = vld.sshfl [vmem:[#allocation1] sm:$0xff pattern:$0x75316420] }
 0x178   :  { %680 = vrot.lane.b32.xlu1 %v676_v7, %s2917_s23  ;;  %756 = vrot.lane.b32.xlu0 %v751_v10, %s2918_s24  ;;  %1385 = vst [vmem:[#allocation1] ss:$2 sm:$0xff] %v3028_v9  ;;  %v3180_v7 = vld [vmem:[%s3914_s6] sm:$0xff] }
 0x179   :  { %754 = vrot.lane.b32.xlu2 %v750_v11, %s2918_s24 }
 0x17f   :  { %v3034_v12 = vld.sshfl [vmem:[#allocation1] sm:$0xff pattern:$0x75316420]  ;;  %v3036_v13 = vld.sshfl [vmem:[#allocation1 + $0x8] sm:$0xff pattern:$0x75316420] }
 0x180   :  { %1435 = vst [vmem:[#allocation1] ss:$2 sm:$0xff] %v3028_v9  ;;  %826 = vperm.xlu0 %2869, %v3180_v7  }
 0x181   :  { %682 = vrot.lane.b32.xlu2 %v677_v8, %s2917_s23  ;;  %v3186_v8 = vld [vmem:[%s3910_s2 + $0xc] sm:$0x3] }
 0x182   :  { %v3925_v11 = vperm.slane %v3186_v8, 0 }
 0x187   :  { %v1436_v14 = vld.sshfl [vmem:[#allocation1] sm:$0xff pattern:$0x75316420]  ;;  %v1437_v15 = vld.sshfl [vmem:[#allocation1 + $0x8] sm:$0xff pattern:$0x75316420] }
 0x188   :  { %v1440_v16 = vsel %vm52_vm0, %v1436_v14, 0.0  ;;  %v1441_v17 = vsel %vm52_vm0, %v1437_v15, 0.0  ;;  %v3924_v14 = vperm.slane %v3186_v8, 1 }
 0x189   :  { %v1442_v20 = vadd.f32 %v1441_v17, %v1440_v16 }
 0x19a   :  { %v202_v21 = vpop.permute.xlu2 %201 }
 0x1a2   :  { %1443 = vadd.xlane.f32.xlu1 %v1442_v20 }
 0x1a3   :  { %v321_v26 = vpop.permute.xlu2 %320 }
 0x1ab   :  { %v179_v39 = vpop.permute.xlu2 %178 }
 0x1b2   :  { %v200_v29 = vpop.permute.xlu1 %199 }
 0x1b3   :  { %v204_v30 = vsel %vm203_vm6, %v200_v29, %v202_v21  ;;  %v205_v31 = vsel %vm203_vm6, %v202_v21, %v200_v29  ;;  %v397_v63 = vpop.permute.xlu2 %396 }
 0x1b4   :  { %v213_v32 = vmul.f32 %v3933_v27, %v205_v31  ;;  %v214_v33 = vmul.f32 %v3932_v28, %v204_v30 }
 0x1b6   :  { %2692 = vmatpush.msk.msra.mxu2 %vm52_vm0, %v213_v32  ;;  %2694 = vmatpush.msk.msra.mxu3 %vm52_vm0, %v214_v33 }
 0x1b7   :  { %2693 = vmatmul.msk.f32.vlgmr.msra.gmra.mxu2 %vm48_vm5, %v3077_v35  ;;  %2695 = vmatmul.msk.f32.vlgmr.msra.gmra.mxu3 %vm48_vm5, %v3077_v35 }
 0x1ba   :  { %v177_v45 = vpop.permute.xlu1 %176  ;;  %v323_v46 = vpop.permute.xlu0 %322 }
 0x1bb   :  { %v183_v47 = vsel %vm182_vm7, %v177_v45, %v179_v39  ;;  %v184_v48 = vsel %vm182_vm7, %v179_v39, %v177_v45  ;;  %v325_v49 = vsel %vm324_vm8, %v321_v26, %v323_v46  ;;  %v326_v50 = vsel %vm324_vm8, %v323_v46, %v321_v26  ;;  %1486 = vperm.xlu1 %2868, %v2769_v44   ;;  %v3207_v26 = vld [vmem:[%s3910_s2 + $0xa] sm:$0x3] }
 0x1bc   :  { %v191_v51 = vmul.f32 %v187_v38, %v184_v48  ;;  %v192_v52 = vmul.f32 %v3936_v41, %v183_v47  ;;  %v334_v54 = vmul.f32 %v3935_v42, %v326_v50  ;;  %v335_v55 = vmul.f32 %v3934_v43, %v325_v49  ;;  %v3229_v47 = vld [vmem:[%s3913_s5 + $0x28] sm:$0xff]  ;;  %v3239_v49 = vld [vmem:[%s3910_s2 + $0x10] sm:$0x3] }
 0x1bd   :  { %v3923_v30 = vperm.slane %v3207_v26, 0  ;;  %v3922_v31 = vperm.slane %v3207_v26, 1  ;;  %v3234_v48 = vld [vmem:[%s3910_s2 + $0xe] sm:$0x3] }
 0x1be   :  { %2696 = vmatpush.msk.msrb.mxu0 %vm52_vm0, %v191_v51  ;;  %2698 = vmatpush.msk.msrb.mxu1 %vm52_vm0, %v192_v52  ;;  %v3921_v50 = vperm.slane %v3234_v48, 0  ;;  %v3920_v51 = vperm.slane %v3234_v48, 1  ;;  %v3919_v52 = vperm.slane %v3239_v49, 0 }
 0x1bf   :  { %2702 = vmatpush.msk.msrb.mxu2 %vm52_vm0, %v334_v54  ;;  %2704 = vmatpush.msk.msrb.mxu3 %vm52_vm0, %v335_v55  ;;  %v3918_v54 = vperm.slane %v3239_v49, 1 }
 0x1c0   :  { %2703 = vmatmul.msk.f32.vlgmr.msrb.gmra.mxu2 %vm48_vm5, %v3125_v59  ;;  %2705 = vmatmul.msk.f32.vlgmr.msrb.gmra.mxu3 %vm48_vm5, %v3125_v59 }
 0x1c1   :  { %2714 = vmatpush.msk.msra.mxu2 %vm52_vm0, %v3016_v1  ;;  %2716 = vmatpush.msk.msra.mxu3 %vm52_vm0, %v3018_v2 }
 0x1c2   :  { %v395_v0 = vpop.permute.xlu1 %394  ;;  %2697 = vmatmul.msk.f32.vlgmr.msrb.gmra.mxu0 %vm48_vm5, %v3132_v60  ;;  %2699 = vmatmul.msk.f32.vlgmr.msrb.gmra.mxu1 %vm48_vm5, %v3132_v60  ;;  %v609_v10 = vpop.permute.xlu2 %608 }
 0x1c3   :  { %v399_v1 = vsel %vm398_vm9, %v395_v0, %v397_v63  ;;  %v400_v2 = vsel %vm398_vm9, %v397_v63, %v395_v0 }
 0x1c4   :  { %v408_v3 = vmul.f32 %v3927_v61, %v400_v2  ;;  %v409_v4 = vmul.f32 %v3926_v62, %v399_v1 }
 0x1c6   :  { %2708 = vmatpush.msk.msra.mxu0 %vm52_vm0, %v408_v3  ;;  %2710 = vmatpush.msk.msra.mxu1 %vm52_vm0, %v409_v4 }
 0x1c8   :  { %2715 = vmatmul.msk.f32.vlgmr.msra.gmra.mxu2 %vm48_vm5, %v3162_v5  ;;  %2717 = vmatmul.msk.f32.vlgmr.msra.gmra.mxu3 %vm48_vm5, %v3162_v5 }
 0x1ca   :  { %2709 = vmatmul.msk.f32.vlgmr.msra.gmra.mxu0 %vm48_vm5, %v3167_v6  ;;  %2711 = vmatmul.msk.f32.vlgmr.msra.gmra.mxu1 %vm48_vm5, %v3167_v6 }
 0x1d2   :  { %v533_v32 = vpop.permute.xlu0 %532 }
 0x1d3   :  { %v755_v29 = vpop.permute.xlu2 %754 }
 0x1da   :  { %v607_v15 = vpop.permute.xlu1 %606 }
 0x1db   :  { %v611_v16 = vsel %vm610_vm10, %v607_v15, %v609_v10  ;;  %v612_v17 = vsel %vm610_vm10, %v609_v10, %v607_v15  ;;  %v683_v55 = vpop.permute.xlu2 %682 }
 0x1dc   :  { %v620_v20 = vmul.f32 %v3925_v11, %v611_v16  ;;  %v621_v21 = vmul.f32 %v3924_v14, %v612_v17 }
 0x1de   :  { %2726 = vmatpush.msk.msrb.mxu2 %vm52_vm0, %v620_v20  ;;  %2728 = vmatpush.msk.msrb.mxu3 %vm52_vm0, %v621_v21  ;;  %v3272_v20 = vld [vmem:[%s3913_s5 + $0x38] sm:$0xff]  ;;  %v3279_v21 = vld [vmem:[%s3913_s5 + $0x40] sm:$0xff] }
 0x1df   :  { %2727 = vmatmul.msk.f32.vlgmr.msrb.gmra.mxu2 %vm48_vm5, %v3202_v23  ;;  %2729 = vmatmul.msk.f32.vlgmr.msrb.gmra.mxu3 %vm48_vm5, %v3202_v23 }
 0x1e2   :  { %v535_v33 = vpop.permute.xlu1 %534 }
 0x1e3   :  { %v537_v39 = vsel %vm536_vm11, %v533_v32, %v535_v33  ;;  %v538_v44 = vsel %vm536_vm11, %v535_v33, %v533_v32 }
 0x1e4   :  { %v546_v45 = vmul.f32 %v3923_v30, %v537_v39  ;;  %v547_v46 = vmul.f32 %v3922_v31, %v538_v44 }
 0x1e6   :  { %2720 = vmatpush.msk.msrb.mxu0 %vm52_vm0, %v546_v45  ;;  %2722 = vmatpush.msk.msrb.mxu1 %vm52_vm0, %v547_v46 }
 0x1e7   :  { %2721 = vmatmul.msk.f32.vlgmr.msrb.gmra.mxu0 %vm48_vm5, %v3229_v47  ;;  %2723 = vmatmul.msk.f32.vlgmr.msrb.gmra.mxu1 %vm48_vm5, %v3229_v47 }
 0x1ea   :  { %v681_v63 = vpop.permute.xlu1 %680  ;;  %v757_v0 = vpop.permute.xlu0 %756 }
 0x1eb   :  { %v685_v1 = vsel %vm684_vm12, %v681_v63, %v683_v55  ;;  %v686_v2 = vsel %vm684_vm12, %v683_v55, %v681_v63  ;;  %v759_v3 = vsel %vm758_vm13, %v755_v29, %v757_v0  ;;  %v760_v4 = vsel %vm758_vm13, %v757_v0, %v755_v29 }
 0x1ec   :  { %v694_v10 = vmul.f32 %v3921_v50, %v685_v1  ;;  %v695_v15 = vmul.f32 %v3920_v51, %v686_v2  ;;  %v768_v16 = vmul.f32 %v3919_v52, %v759_v3  ;;  %v769_v17 = vmul.f32 %v3918_v54, %v760_v4  ;;  %v35_v1 = vld [vmem:[%s3909_s1 + $0x8] sm:$0xff]  ;;  %v3303_v2 = vpop.f32.mrf.mxu0 }
 0x1ee   :  { %2732 = vmatpush.msk.msra.mxu0 %vm52_vm0, %v694_v10  ;;  %2734 = vmatpush.msk.msra.mxu1 %vm52_vm0, %v695_v15 }
 0x1ef   :  { %2738 = vmatpush.msk.msra.mxu2 %vm52_vm0, %v768_v16  ;;  %2740 = vmatpush.msk.msra.mxu3 %vm52_vm0, %v769_v17 }
 0x1f0   :  { %2733 = vmatmul.msk.f32.vlgmr.msra.gmra.mxu0 %vm48_vm5, %v3272_v20  ;;  %2735 = vmatmul.msk.f32.vlgmr.msra.gmra.mxu1 %vm48_vm5, %v3272_v20 }
 0x1f1   :  { %2739 = vmatmul.msk.f32.vlgmr.msra.gmra.mxu2 %vm48_vm5, %v3279_v21  ;;  %2741 = vmatmul.msk.f32.vlgmr.msra.gmra.mxu3 %vm48_vm5, %v3279_v21 }
 0x215   :  { %v1444_v29 = vpop.xlane.xlu1 %1443 }
 0x216   :  { %v1445_v32 = vmul.f32 %v1444_v29, %v2981_v18 }
 0x218   :  { %v1450_v33 = vperm.slane %v1445_v32, %v2983_v19 }
 0x21a   :  { %v3294_v39 = vsub.f32 %v3028_v9, %v1450_v33  ;;  %v3305_v9 = vpop.f32.mrf.mxu1 }
 0x21c   :  { %v1453_v44 = vmul.f32 %v3294_v39, %v3294_v39 }
 0x21e   :  { %1455 = vst [vmem:[#allocation1] ss:$2 sm:$0xff] %v1453_v44 }
 0x225   :  { %v1456_v45 = vld.sshfl [vmem:[#allocation1] sm:$0xff pattern:$0x75316420]  ;;  %v1457_v46 = vld.sshfl [vmem:[#allocation1 + $0x8] sm:$0xff pattern:$0x75316420] }
 0x226   :  { %v1460_v55 = vsel %vm52_vm0, %v1456_v45, 0.0  ;;  %v1461_v63 = vsel %vm52_vm0, %v1457_v46, 0.0 }
 0x227   :  { %v1462_v0 = vadd.f32 %v1461_v63, %v1460_v55 }
 0x229   :  { %1463 = vadd.xlane.f32.xlu0 %v1462_v0 }
 0x23a   :  { %v243_v3 = vpop.f32.mrf.mxu2  ;;  %v263_v4 = vpop.f32.mrf.mxu3 }
 0x23d   :  { %865 = vperm.xlu0 %2869, %v35_v1  }
 0x23f   :  { %v292_v10 = vpop.f32.mrf.mxu0  ;;  %v312_v15 = vpop.f32.mrf.mxu1 }
 0x240   :  { %v293_v33 = vadd.f32 %v292_v10, %v243_v3  ;;  %v313_v44 = vadd.f32 %v312_v15, %v263_v4  ;;  %v827_v10 = vpop.permute.xlu0 %826 }
 0x243   :  { %v364_v16 = vpop.f32.mrf.mxu2  ;;  %v384_v17 = vpop.f32.mrf.mxu3 }
 0x244   :  { %v387_v45 = vadd.f32 %v364_v16, %v293_v33  ;;  %v388_v46 = vadd.f32 %v384_v17, %v313_v44 }
 0x247   :  { %v438_v29 = vpop.f32.mrf.mxu0  ;;  %v458_v32 = vpop.f32.mrf.mxu1 }
 0x248   :  { %v461_v54 = vadd.f32 %v438_v29, %v387_v45  ;;  %v462_v52 = vadd.f32 %v458_v32, %v388_v46 }
 0x24b   :  { %v502_v55 = vpop.f32.mrf.mxu2  ;;  %v522_v63 = vpop.f32.mrf.mxu3 }
 0x24c   :  { %v525_v51 = vadd.f32 %v502_v55, %v461_v54  ;;  %v526_v50 = vadd.f32 %v522_v63, %v462_v52 }
 0x262   :  { %v650_v31 = vpop.f32.mrf.mxu2  ;;  %v670_v30 = vpop.f32.mrf.mxu3 }
 0x264   :  { %v576_v0 = vpop.f32.mrf.mxu0  ;;  %v596_v1 = vpop.f32.mrf.mxu1 }
 0x265   :  { %v599_v14 = vadd.f32 %v576_v0, %v525_v51  ;;  %v600_v11 = vadd.f32 %v596_v1, %v526_v50 }
 0x267   :  { %v673_v56 = vadd.f32 %v650_v31, %v599_v14  ;;  %v674_v57 = vadd.f32 %v670_v30, %v600_v11 }
 0x26d   :  { %v724_v62 = vpop.f32.mrf.mxu0  ;;  %v744_v61 = vpop.f32.mrf.mxu1 }
 0x26e   :  { %v747_v3 = vadd.f32 %v724_v62, %v673_v56  ;;  %v748_v4 = vadd.f32 %v744_v61, %v674_v57  ;;  %v1487_v61 = vpop.permute.xlu1 %1486 }
 0x26f   :  { %v1491_v31 = vperm.slane %v1487_v61, %v159_v40  ;;  %v1497_v55 = vperm.slane %v1487_v61, %v2983_v19 }
 0x274   :  { %v798_v15 = vpop.f32.mrf.mxu2  ;;  %v818_v16 = vpop.f32.mrf.mxu3 }
 0x275   :  { %v821_v17 = vadd.f32 %v798_v15, %v747_v3  ;;  %v822_v33 = vadd.f32 %v818_v16, %v748_v4 }
 0x277   :  { %v829_v44 = vadd.f32 %v827_v10, %v821_v17  ;;  %v830_v29 = vadd.f32 %v827_v10, %v822_v33  ;;  %v3320_v10 = vld [vmem:[%s3910_s2 + $0x8] sm:$0x3] }
 0x279   :  { %v831_v32 = vadd.f32 %v830_v29, %v829_v44 }
 0x27b   :  { %832 = vadd.xlane.f32.xlu2 %v831_v32 }
 0x29c   :  { %v1464_v52 = vpop.xlane.xlu0 %1463 }
 0x29d   :  { %v1465_v54 = vmul.f32 %v1464_v52, %v2981_v18 }
 0x29f   :  { %v1466_v51 = vadd.f32 1e-05, %v1465_v54 }
 0x2a1   :  { %2875 = vrsqrt.f32 %v1466_v51  ;;  %vm1473_vm14 = vweird.f32 %v1466_v51 }
 0x2a7   :  { %v2876_v50 = vpop.eup %2875 }
 0x2a8   :  { %v1468_v45 = vmul.f32 %v2876_v50, %v1466_v51  ;;  %vm1474_vm15 = vweird.f32 %v2876_v50 }
 0x2a9   :  { %vm1475_vm1 = vmor %vm1473_vm14, %vm1474_vm15  ;;  %vm891_vm14 = vcmask 64512  }
 0x2aa   :  { %v1469_v14 = vmul.f32 %v2876_v50, %v1468_v45 }
 0x2ac   :  { %v1470_v11 = vmul.f32 0.5, %v1469_v14 }
 0x2ae   :  { %v1471_v56 = vsub.f32 1.5, %v1470_v11 }
 0x2af   :  { %v866_v43 = vpop.permute.xlu0 %865 }
 0x2b0   :  { %v1472_v57 = vmul.f32 %v2876_v50, %v1471_v56 }
 0x2b2   :  { %v1476_v62 = vsel %vm1475_vm1, %v2876_v50, %v1472_v57 }
 0x2b3   :  { %v1481_v30 = vperm.slane %v1476_v62, %v2983_v19  ;;  %v3930_v19 = vperm.slane %v3320_v10, 1 }
 0x2b5   :  { %v1483_v46 = vmul.f32 %v1481_v30, %v3294_v39  ;;  %v3931_v39 = vperm.slane %v3320_v10, 0  ;;  %v1786_v15 = vrot.slane %v3930_v19, 4 }
 0x2b7   :  { %v1493_v63 = vmul.f32 %v1491_v31, %v1483_v46  ;;  %v1787_v33 = vsel %vm52_vm0, %v3931_v39, %v1786_v15  ;;  %v36_v15 = vld [vmem:[%s3909_s1 + $0x10] sm:$0xff] }
 0x2b9   :  { %v1499_v0 = vadd.f32 %v1497_v55, %v1493_v63 }
 0x2bb   :  { %v1500_v1 = vmax.f32 %v1499_v0, 0.0 }
 0x2bd   :  { %1502 = vst [vmem:[#allocation1] ss:$2 sm:$0xff] %v1500_v1  ;;  %v1789_v32 = vmul.f32 %v1787_v33, %v1500_v1 }
 0x2c4   :  { %v3313_v3 = vld.sshfl [vmem:[#allocation1 + $0x8] sm:$0xff pattern:$0x75316420]  ;;  %v3315_v4 = vld.sshfl [vmem:[#allocation1] sm:$0xff pattern:$0x75316420] }
 0x2c5   :  { %1522 = vst [vmem:[#allocation1] ss:$2 sm:$0xff] %v1500_v1 }
 0x2cc   :  { %v3322_v37 = vld.sshfl [vmem:[#allocation1 + $0x8] sm:$0xff pattern:$0x75316420]  ;;  %v3324_v40 = vld.sshfl [vmem:[#allocation1] sm:$0xff pattern:$0x75316420] }
 0x2cd   :  { %1640 = vst [vmem:[#allocation1] ss:$2 sm:$0xff] %v1500_v1 }
 0x2d4   :  { %v3330_v16 = vld.sshfl [vmem:[#allocation1] sm:$0xff pattern:$0x75316420]  ;;  %v3332_v17 = vld.sshfl [vmem:[#allocation1 + $0x8] sm:$0xff pattern:$0x75316420] }
 0x2d5   :  { %1711 = vst [vmem:[#allocation1] ss:$2 sm:$0xff] %v1500_v1 }
 0x2dc   :  { %v3337_v52 = vld.sshfl [vmem:[#allocation1] sm:$0xff pattern:$0x75316420]  ;;  %v3339_v54 = vld.sshfl [vmem:[#allocation1 + $0x8] sm:$0xff pattern:$0x75316420] }
 0x2dd   :  { %1792 = vst [vmem:[#allocation1] ss:$2 sm:$0xff] %v1789_v32 }
 0x2e4   :  { %v3341_v51 = vld.sshfl [vmem:[#allocation1] sm:$0xff pattern:$0x75316420]  ;;  %v3343_v50 = vld.sshfl [vmem:[#allocation1 + $0x8] sm:$0xff pattern:$0x75316420] }
 0x2e5   :  { %1844 = vst [vmem:[#allocation1] ss:$2 sm:$0xff] %v1500_v1 }
 0x2ec   :  { %v3345_v45 = vld.sshfl [vmem:[#allocation1 + $0x8] sm:$0xff pattern:$0x75316420]  ;;  %v3347_v14 = vld.sshfl [vmem:[#allocation1] sm:$0xff pattern:$0x75316420] }
 0x2ed   :  { %1915 = vst [vmem:[#allocation1] ss:$2 sm:$0xff] %v1500_v1 }
 0x2ee   :  { %v833_v11 = vpop.xlane.xlu2 %832 }
 0x2ef   :  { %v834_v56 = vmul.f32 %v833_v11, %v2981_v18 }
 0x2f1   :  { %v835_v57 = vsub.f32 %v829_v44, %v834_v56  ;;  %v836_v61 = vsub.f32 %v830_v29, %v834_v56 }
 0x2f3   :  { %v837_v62 = vmul.f32 %v835_v57, %v835_v57  ;;  %v838_v30 = vmul.f32 %v836_v61, %v836_v61 }
 0x2f4   :  { %v1916_v31 = vld.sshfl [vmem:[#allocation1] sm:$0xff pattern:$0x75316420]  ;;  %v1917_v46 = vld.sshfl [vmem:[#allocation1 + $0x8] sm:$0xff pattern:$0x75316420] }
 0x2f5   :  { %v839_v55 = vadd.f32 %v838_v30, %v837_v62  ;;  %1986 = vst [vmem:[#allocation1] ss:$2 sm:$0xff] %v1500_v1 }
 0x2f7   :  { %840 = vadd.xlane.f32.xlu2 %v839_v55 }
 0x2fc   :  { %v1987_v63 = vld.sshfl [vmem:[#allocation1] sm:$0xff pattern:$0x75316420]  ;;  %v1988_v0 = vld.sshfl [vmem:[#allocation1 + $0x8] sm:$0xff pattern:$0x75316420] }
 0x2fd   :  { %2057 = vst [vmem:[#allocation1] ss:$2 sm:$0xff] %v1500_v1 }
 0x30f   :  { %858 = vperm.xlu2 %2870, %v36_v15  }
 0x36a   :  { %v841_v33 = vpop.xlane.xlu2 %840 }
 0x36b   :  { %v842_v32 = vmul.f32 %v841_v33, %v2981_v18 }
 0x36d   :  { %v843_v44 = vadd.f32 1e-05, %v842_v32 }
 0x36f   :  { %2877 = vrsqrt.f32 %v843_v44  ;;  %vm850_vm3 = vweird.f32 %v843_v44 }
 0x372   :  { %v859_v55 = vpop.permute.xlu2 %858 }
 0x375   :  { %v2878_v29 = vpop.eup %2877 }
 0x376   :  { %v845_v11 = vmul.f32 %v2878_v29, %v843_v44  ;;  %vm851_vm2 = vweird.f32 %v2878_v29 }
 0x377   :  { %vm852_vm4 = vmor %vm850_vm3, %vm851_vm2 }
 0x378   :  { %v846_v56 = vmul.f32 %v2878_v29, %v845_v11 }
 0x37a   :  { %v847_v19 = vmul.f32 0.5, %v846_v56  ;;  %v3947_v56 = vperm.slane %v3056_v25, 1 }
 0x37c   :  { %v848_v62 = vsub.f32 1.5, %v847_v19 }
 0x37e   :  { %v849_v30 = vmul.f32 %v2878_v29, %v848_v62 }
 0x380   :  { %v853_v1 = vsel %vm852_vm4, %v2878_v29, %v849_v30  ;;  %v3946_v29 = vperm.slane %v3056_v25, 0  ;;  %v3459_v30 = vld [vmem:[%s3915_s7 + $0x8] sm:$0xff]  ;;  %v3949_v25 = vperm.slane %v3000_v53, 1 }
 0x381   :  { %v854_v39 = vmul.f32 %v853_v1, %v835_v57  ;;  %v855_v28 = vmul.f32 %v853_v1, %v836_v61 }
 0x383   :  { %v861_v27 = vmul.f32 %v859_v55, %v854_v39  ;;  %v862_v15 = vmul.f32 %v859_v55, %v855_v28  ;;  %v2058_v28 = vld.sshfl [vmem:[#allocation1] sm:$0xff pattern:$0x75316420] }
 0x385   :  { %v868_v42 = vadd.f32 %v866_v43, %v861_v27  ;;  %v869_v33 = vadd.f32 %v866_v43, %v862_v15  ;;  %v2059_v27 = vld.sshfl [vmem:[#allocation1 + $0x8] sm:$0xff pattern:$0x75316420]  ;;  %v2770_v43 = vld [vmem:[%s3909_s1 + $0x20] sm:$0xff] }
 0x387   :  { %v3354_v32 = vmax.f32 %v868_v42, 0.0  ;;  %v3356_v41 = vmax.f32 %v869_v33, 0.0  ;;  %v2771_v42 = vld [vmem:[%s3909_s1 + $0x28] sm:$0xff] }
 0x389   :  { %874 = vrot.lane.b32.xlu2 %v3356_v41, %s2912_s16  ;;  %881 = vrot.lane.b32.xlu0 %v3354_v32, %s2911_s15  ;;  %v1091_v55 = vmul.f32 %v3356_v41, %v3949_v25  ;;  %v3549_v25 = vld [vmem:[%s3915_s7 + $0x30] sm:$0xff] }
 0x38a   :  { %872 = vrot.lane.b32.xlu1 %v3354_v32, %s2912_s16 }
 0x391   :  { %978 = vrot.lane.b32.xlu2 %v3354_v32, %s2913_s17  ;;  %980 = vrot.lane.b32.xlu0 %v3356_v41, %s2913_s17 }
 0x392   :  { %883 = vrot.lane.b32.xlu1 %v3356_v41, %s2911_s15 }
 0x399   :  { %1035 = vrot.lane.b32.xlu2 %v3356_v41, %s2914_s18  ;;  %1139 = vrot.lane.b32.xlu0 %v3354_v32, %s2915_s19 }
 0x39a   :  { %1033 = vrot.lane.b32.xlu1 %v3354_v32, %s2914_s18 }
 0x3a1   :  { %1194 = vrot.lane.b32.xlu2 %v3354_v32, %s2916_s20  ;;  %1196 = vrot.lane.b32.xlu0 %v3356_v41, %s2916_s20 }
 0x3a2   :  { %1141 = vrot.lane.b32.xlu1 %v3356_v41, %s2915_s19 }
 0x3a9   :  { %1251 = vrot.lane.b32.xlu2 %v3356_v41, %s2917_s23  ;;  %1509 = vrot.lane.b32.xlu0 %v3313_v3, %s2912_s16 }
 0x3aa   :  { %1249 = vrot.lane.b32.xlu1 %v3354_v32, %s2917_s23 }
 0x3b1   :  { %1507 = vrot.lane.b32.xlu2 %v3315_v4, %s2912_s16  ;;  %1304 = vrot.lane.b32.xlu0 %v3354_v32, %s2918_s24 }
 0x3b2   :  { %1306 = vrot.lane.b32.xlu1 %v3356_v41, %s2918_s24  ;;  %v3482_v41 = vld [vmem:[%s3915_s7 + $0x10] sm:$0xff] }
 0x3b9   :  { %1529 = vrot.lane.b32.xlu2 %v3322_v37, %s2911_s15  ;;  %1645 = vrot.lane.b32.xlu0 %v3330_v16, %s2913_s17 }
 0x3ba   :  { %1527 = vrot.lane.b32.xlu1 %v3324_v40, %s2911_s15 }
 0x3c1   :  { %1716 = vrot.lane.b32.xlu2 %v3337_v52, %s2914_s18  ;;  %1718 = vrot.lane.b32.xlu0 %v3339_v54, %s2914_s18  ;;  %v3434_v54 = vld [vmem:[%s3915_s7] sm:$0xff] }
 0x3c2   :  { %1647 = vrot.lane.b32.xlu1 %v3332_v17, %s2913_s17  ;;  %v3943_v17 = vperm.slane %v3072_v34, 1 }
 0x3c9   :  { %1851 = vrot.lane.b32.xlu2 %v3345_v45, %s2915_s19  ;;  %1920 = vrot.lane.b32.xlu0 %v1916_v31, %s2916_s20 }
 0x3ca   :  { %1849 = vrot.lane.b32.xlu1 %v3347_v14, %s2915_s19 }
 0x3d1   :  { %1991 = vrot.lane.b32.xlu2 %v1987_v63, %s2917_s23  ;;  %1993 = vrot.lane.b32.xlu0 %v1988_v0, %s2917_s23  ;;  %v3945_v0 = vperm.slane %v3082_v36, 1 }
 0x3d2   :  { %1922 = vrot.lane.b32.xlu1 %v1917_v46, %s2916_s20  ;;  %v3944_v46 = vperm.slane %v3082_v36, 0  ;;  %v3948_v36 = vperm.slane %v3000_v53, 0 }
 0x3d4   :  { %v1090_v1 = vmul.f32 %v3354_v32, %v3948_v36  ;;  %v3951_v32 = vperm.slane %v3118_v58, 1  ;;  %v3957_v36 = vperm.slane %v3234_v48, 1 }
 0x3d9   :  { %2064 = vrot.lane.b32.xlu2 %v2059_v27, %s2918_s24  ;;  %2131 = vperm.xlu0 %2869, %v3180_v7  }
 0x3da   :  { %2062 = vrot.lane.b32.xlu1 %v2058_v28, %s2918_s24 }
 0x3e1   :  { %2163 = vperm.xlu0 %2869, %v2771_v42   ;;  %v3950_v42 = vperm.slane %v3118_v58, 0 }
 0x3e3   :  { %v875_v3 = vpop.permute.xlu2 %874 }
 0x3e9   :  { %2170 = vperm.xlu0 %2869, %v2770_v43  }
 0x3eb   :  { %v979_v4 = vpop.permute.xlu2 %978 }
 0x3f3   :  { %v1036_v40 = vpop.permute.xlu2 %1035 }
 0x3fb   :  { %v882_v37 = vpop.permute.xlu0 %881  ;;  %v1195_v31 = vpop.permute.xlu2 %1194 }
 0x3fc   :  { %v873_v19 = vpop.permute.xlu1 %872 }
 0x3fd   :  { %v876_v7 = vsel %vm182_vm7, %v873_v19, %v875_v3  ;;  %v877_v39 = vsel %vm182_vm7, %v875_v3, %v873_v19  ;;  %v3487_v3 = vld [vmem:[%s3915_s7 + $0x18] sm:$0xff] }
 0x3fe   :  { %v878_v16 = vmul.f32 %v877_v39, %v187_v38  ;;  %v879_v52 = vmul.f32 %v876_v7, %v3943_v17  ;;  %v3952_v7 = vperm.slane %v3186_v8, 0 }
 0x400   :  { %953 = vmatpush.msrb.mxu2 %v878_v16  ;;  %973 = vmatpush.msrb.mxu3 %v879_v52  ;;  %v3953_v16 = vperm.slane %v3186_v8, 1  ;;  %v3521_v8 = vld [vmem:[%s3915_s7 + $0x28] sm:$0xff] }
 0x401   :  { %2745 = vmatmul.msk.f32.vlgmr.msrb.gmra.mxu2 %vm891_vm14, %v3434_v54  ;;  %2746 = vmatmul.msk.f32.vlgmr.msrb.gmra.mxu3 %vm891_vm14, %v3434_v54 }
 0x403   :  { %v981_v45 = vpop.permute.xlu0 %980 }
 0x404   :  { %v982_v38 = vsel %vm324_vm8, %v979_v4, %v981_v45  ;;  %v983_v34 = vsel %vm324_vm8, %v981_v45, %v979_v4  ;;  %v884_v14 = vpop.permute.xlu1 %883  ;;  %v1252_v4 = vpop.permute.xlu2 %1251 }
 0x405   :  { %v885_v57 = vsel %vm203_vm6, %v882_v37, %v884_v14  ;;  %v886_v61 = vsel %vm203_vm6, %v884_v14, %v882_v37  ;;  %v984_v63 = vmul.f32 %v983_v34, %v3944_v46  ;;  %v985_v44 = vmul.f32 %v982_v38, %v3945_v0 }
 0x406   :  { %v887_v11 = vmul.f32 %v886_v61, %v3946_v29  ;;  %v888_v62 = vmul.f32 %v885_v57, %v3947_v56  ;;  %v3954_v38 = vperm.slane %v3207_v26, 0  ;;  %v3955_v14 = vperm.slane %v3207_v26, 1  ;;  %v3516_v61 = vld [vmem:[%s3915_s7 + $0x20] sm:$0xff] }
 0x407   :  { %v3956_v56 = vperm.slane %v3234_v48, 0 }
 0x408   :  { %910 = vmatpush.msrb.mxu0 %v887_v11  ;;  %930 = vmatpush.msrb.mxu1 %v888_v62 }
 0x409   :  { %2743 = vmatmul.msk.f32.vlgmr.msrb.gmra.mxu0 %vm891_vm14, %v3459_v30  ;;  %2744 = vmatmul.msk.f32.vlgmr.msrb.gmra.mxu1 %vm891_vm14, %v3459_v30 }
 0x40a   :  { %1006 = vmatpush.msra.mxu0 %v984_v63  ;;  %1026 = vmatpush.msra.mxu1 %v985_v44 }
 0x40b   :  { %v1140_v15 = vpop.permute.xlu0 %1139 }
 0x40c   :  { %1112 = vmatpush.msrb.mxu0 %v1090_v1  ;;  %1132 = vmatpush.msrb.mxu1 %v1091_v55  ;;  %v1034_v33 = vpop.permute.xlu1 %1033  ;;  %v1508_v26 = vpop.permute.xlu2 %1507 }
 0x40d   :  { %v1037_v27 = vsel %vm398_vm9, %v1034_v33, %v1036_v40  ;;  %v1038_v28 = vsel %vm398_vm9, %v1036_v40, %v1034_v33  ;;  %v3558_v33 = vld [vmem:[%s3915_s7 + $0x38] sm:$0xff] }
 0x40e   :  { %v1039_v43 = vmul.f32 %v1038_v28, %v3950_v42  ;;  %v1040_v53 = vmul.f32 %v1037_v27, %v3951_v32 }
 0x410   :  { %1061 = vmatpush.msra.mxu2 %v1039_v43  ;;  %1081 = vmatpush.msra.mxu3 %v1040_v53 }
 0x411   :  { %2748 = vmatmul.msk.f32.vlgmr.msra.gmra.mxu0 %vm891_vm14, %v3482_v41  ;;  %2749 = vmatmul.msk.f32.vlgmr.msra.gmra.mxu1 %vm891_vm14, %v3482_v41 }
 0x412   :  { %2751 = vmatmul.msk.f32.vlgmr.msra.gmra.mxu2 %vm891_vm14, %v3487_v3  ;;  %2752 = vmatmul.msk.f32.vlgmr.msra.gmra.mxu3 %vm891_vm14, %v3487_v3 }
 0x413   :  { %v1197_v58 = vpop.permute.xlu0 %1196 }
 0x414   :  { %v1198_v37 = vsel %vm610_vm10, %v1195_v31, %v1197_v58  ;;  %v1199_v40 = vsel %vm610_vm10, %v1197_v58, %v1195_v31  ;;  %v1142_v19 = vpop.permute.xlu1 %1141  ;;  %v3534_v31 = vld [vmem:[%s3910_s2] sm:$0x3]  ;;  %v1530_v42 = vpop.permute.xlu2 %1529 }
 0x415   :  { %v1200_v39 = vmul.f32 %v1198_v37, %v3952_v7  ;;  %v1201_v17 = vmul.f32 %v1199_v40, %v3953_v16  ;;  %v1143_v52 = vsel %vm536_vm11, %v1140_v15, %v1142_v19  ;;  %v1144_v45 = vsel %vm536_vm11, %v1142_v19, %v1140_v15  ;;  %v3594_v40 = vld [vmem:[%s3910_s2 + $0x2] sm:$0x3] }
 0x416   :  { %v1145_v34 = vmul.f32 %v1143_v52, %v3954_v38  ;;  %v1146_v57 = vmul.f32 %v1144_v45, %v3955_v14  ;;  %v1515_v29 = vperm.slane %v3534_v31, 0  ;;  %v1516_v11 = vperm.slane %v3534_v31, 1 }
 0x417   :  { %1222 = vmatpush.msra.mxu0 %v1200_v39  ;;  %1242 = vmatpush.msra.mxu1 %v1201_v17  ;;  %v1536_v19 = vperm.slane %v3594_v40, 1 }
 0x418   :  { %1167 = vmatpush.msrb.mxu2 %v1145_v34  ;;  %1187 = vmatpush.msrb.mxu3 %v1146_v57  ;;  %v3622_v34 = vld [vmem:[%s3910_s2 + $0x4] sm:$0x3] }
 0x419   :  { %2754 = vmatmul.msk.f32.vlgmr.msrb.gmra.mxu0 %vm891_vm14, %v3516_v61  ;;  %2755 = vmatmul.msk.f32.vlgmr.msrb.gmra.mxu1 %vm891_vm14, %v3516_v61 }
 0x41a   :  { %2757 = vmatmul.msk.f32.vlgmr.msrb.gmra.mxu2 %vm891_vm14, %v3521_v8  ;;  %2758 = vmatmul.msk.f32.vlgmr.msrb.gmra.mxu3 %vm891_vm14, %v3521_v8 }
 0x41b   :  { %v1510_v46 = vpop.permute.xlu0 %1509 }
 0x41c   :  { %v1250_v63 = vpop.permute.xlu1 %1249  ;;  %v1511_v55 = vsel %vm182_vm7, %v1508_v26, %v1510_v46  ;;  %v1512_v15 = vsel %vm182_vm7, %v1510_v46, %v1508_v26  ;;  %v1717_v52 = vpop.permute.xlu2 %1716  ;;  %v1653_v26 = vperm.slane %v3622_v34, 0  ;;  %v1654_v46 = vperm.slane %v3622_v34, 1 }
 0x41d   :  { %v1253_v0 = vsel %vm684_vm12, %v1250_v63, %v1252_v4  ;;  %v1254_v44 = vsel %vm684_vm12, %v1252_v4, %v1250_v63  ;;  %v1519_v48 = vmul.f32 %v1515_v29, %v1512_v15  ;;  %v1520_v27 = vmul.f32 %v1516_v11, %v1511_v55  ;;  %v3659_v15 = vld [vmem:[%s3910_s2 + $0xa] sm:$0x3] }
 0x41e   :  { %v1255_v62 = vmul.f32 %v1253_v0, %v3956_v56  ;;  %v1256_v1 = vmul.f32 %v1254_v44, %v3957_v36  ;;  %v3958_v4 = vperm.slane %v3239_v49, 0 }
 0x420   :  { %1277 = vmatpush.msra.mxu2 %v1255_v62  ;;  %1297 = vmatpush.msra.mxu3 %v1256_v1 }
 0x421   :  { %2760 = vmatmul.msk.f32.vlgmr.msra.gmra.mxu0 %vm891_vm14, %v3549_v25  ;;  %2761 = vmatmul.msk.f32.vlgmr.msra.gmra.mxu1 %vm891_vm14, %v3549_v25 }
 0x422   :  { %2763 = vmatmul.msk.f32.vlgmr.msra.gmra.mxu2 %vm891_vm14, %v3558_v33  ;;  %2764 = vmatmul.msk.f32.vlgmr.msra.gmra.mxu3 %vm891_vm14, %v3558_v33 }
 0x423   :  { %2772 = vmatpush.msk.msrb.mxu2 %vm52_vm0, %v3034_v12  ;;  %2774 = vmatpush.msk.msrb.mxu3 %vm52_vm0, %v3036_v13  ;;  %v1305_v28 = vpop.permute.xlu0 %1304  ;;  %v3959_v12 = vperm.slane %v3239_v49, 1  ;;  %v3589_v13 = vld [vmem:[%s3915_s7 + $0x40] sm:$0xff]  ;;  %v1535_v49 = vperm.slane %v3594_v40, 0 }
 0x424   :  { %v1307_v43 = vpop.permute.xlu1 %1306 }
 0x425   :  { %2782 = vmatpush.msk.msra.mxu2 %vm52_vm0, %v1519_v48  ;;  %2784 = vmatpush.msk.msra.mxu3 %vm52_vm0, %v1520_v27  ;;  %v1308_v32 = vsel %vm758_vm13, %v1305_v28, %v1307_v43  ;;  %v1309_v53 = vsel %vm758_vm13, %v1307_v43, %v1305_v28  ;;  %v1852_v48 = vpop.permute.xlu2 %1851  ;;  %v1857_v27 = vperm.slane %v3659_v15, 0  ;;  %v1858_v28 = vperm.slane %v3659_v15, 1 }
 0x426   :  { %v1310_v58 = vmul.f32 %v1308_v32, %v3958_v4  ;;  %v1311_v37 = vmul.f32 %v1309_v53, %v3959_v12 }
 0x428   :  { %1332 = vmatpush.msrb.mxu0 %v1310_v58  ;;  %1352 = vmatpush.msrb.mxu1 %v1311_v37 }
 0x429   :  { %2766 = vmatmul.msk.f32.vlgmr.msrb.gmra.mxu0 %vm891_vm14, %v3589_v13  ;;  %2767 = vmatmul.msk.f32.vlgmr.msrb.gmra.mxu1 %vm891_vm14, %v3589_v13 }
 0x42a   :  { %2773 = vmatmul.msk.f32.vlgmr.msrb.gmra.mxu2 %vm48_vm5, %v3045_v22  ;;  %2775 = vmatmul.msk.f32.vlgmr.msrb.gmra.mxu3 %vm48_vm5, %v3045_v22  ;;  %v3617_v22 = vld [vmem:[%s3910_s2 + $0x6] sm:$0x3] }
 0x42b   :  { %v1646_v7 = vpop.permute.xlu0 %1645  ;;  %v1724_v14 = vperm.slane %v3617_v22, 0  ;;  %v1725_v57 = vperm.slane %v3617_v22, 1 }
 0x42c   :  { %v1528_v39 = vpop.permute.xlu1 %1527 }
 0x42d   :  { %v1531_v16 = vsel %vm203_vm6, %v1528_v39, %v1530_v42  ;;  %v1532_v17 = vsel %vm203_vm6, %v1530_v42, %v1528_v39  ;;  %v1992_v12 = vpop.permute.xlu2 %1991 }
 0x42e   :  { %v1539_v45 = vmul.f32 %v1535_v49, %v1532_v17  ;;  %v1540_v38 = vmul.f32 %v1536_v19, %v1531_v16 }
 0x430   :  { %2778 = vmatpush.msk.msra.mxu0 %vm52_vm0, %v1539_v45  ;;  %2780 = vmatpush.msk.msra.mxu1 %vm52_vm0, %v1540_v38 }
 0x431   :  { %2779 = vmatmul.msk.f32.vlgmr.msra.gmra.mxu0 %vm48_vm5, %v3077_v35  ;;  %2781 = vmatmul.msk.f32.vlgmr.msra.gmra.mxu1 %vm48_vm5, %v3077_v35 }
 0x432   :  { %2783 = vmatmul.msk.f32.vlgmr.msra.gmra.mxu2 %vm48_vm5, %v3132_v60  ;;  %2785 = vmatmul.msk.f32.vlgmr.msra.gmra.mxu3 %vm48_vm5, %v3132_v60 }
 0x433   :  { %v1719_v63 = vpop.permute.xlu0 %1718 }
 0x434   :  { %v1720_v0 = vsel %vm398_vm9, %v1717_v52, %v1719_v63  ;;  %v1721_v35 = vsel %vm398_vm9, %v1719_v63, %v1717_v52  ;;  %v1648_v44 = vpop.permute.xlu1 %1647 }
 0x435   :  { %v1728_v56 = vmul.f32 %v1724_v14, %v1721_v35  ;;  %v1729_v62 = vmul.f32 %v1725_v57, %v1720_v0  ;;  %v1649_v60 = vsel %vm324_vm8, %v1646_v7, %v1648_v44  ;;  %v1650_v36 = vsel %vm324_vm8, %v1648_v44, %v1646_v7  ;;  %v3730_v35 = vld [vmem:[%s3910_s2 + $0x10] sm:$0x3] }
 0x436   :  { %v1657_v1 = vmul.f32 %v1653_v26, %v1650_v36  ;;  %v1658_v55 = vmul.f32 %v1654_v46, %v1649_v60  ;;  %v3940_v44 = vperm.slane %v3730_v35, 0 }
 0x437   :  { %2794 = vmatpush.msk.msrb.mxu2 %vm52_vm0, %v1728_v56  ;;  %2796 = vmatpush.msk.msrb.mxu3 %vm52_vm0, %v1729_v62  ;;  %v3939_v56 = vperm.slane %v3730_v35, 1  ;;  %v2065_v62 = vpop.permute.xlu2 %2064 }
 0x438   :  { %2788 = vmatpush.msk.msrb.mxu0 %vm52_vm0, %v1657_v1  ;;  %2790 = vmatpush.msk.msrb.mxu1 %vm52_vm0, %v1658_v55 }
 0x439   :  { %2789 = vmatmul.msk.f32.vlgmr.msrb.gmra.mxu0 %vm48_vm5, %v3125_v59  ;;  %2791 = vmatmul.msk.f32.vlgmr.msrb.gmra.mxu1 %vm48_vm5, %v3125_v59 }
 0x43a   :  { %2795 = vmatmul.msk.f32.vlgmr.msrb.gmra.mxu2 %vm48_vm5, %v3167_v6  ;;  %2797 = vmatmul.msk.f32.vlgmr.msrb.gmra.mxu3 %vm48_vm5, %v3167_v6 }
 0x43b   :  { %2800 = vmatpush.msk.msra.mxu0 %vm52_vm0, %v3341_v51  ;;  %2802 = vmatpush.msk.msra.mxu1 %vm52_vm0, %v3343_v50  ;;  %v1921_v42 = vpop.permute.xlu0 %1920  ;;  %v3688_v51 = vld [vmem:[%s3910_s2 + $0xe] sm:$0x3]  ;;  %v3693_v50 = vld [vmem:[%s3910_s2 + $0xc] sm:$0x3] }
 0x43c   :  { %v1850_v43 = vpop.permute.xlu1 %1849  ;;  %v3938_v4 = vperm.slane %v3688_v51, 0  ;;  %v3937_v58 = vperm.slane %v3688_v51, 1  ;;  %v3942_v37 = vperm.slane %v3693_v50, 0  ;;  %v3941_v7 = vperm.slane %v3693_v50, 1 }
 0x43d   :  { %v1853_v59 = vsel %vm536_vm11, %v1850_v43, %v1852_v48  ;;  %v1854_v32 = vsel %vm536_vm11, %v1852_v48, %v1850_v43  ;;  %v3962_v15 = vperm.slane %v3693_v50, 0 }
 0x43e   :  { %v1861_v6 = vmul.f32 %v1857_v27, %v1853_v59  ;;  %v1862_v53 = vmul.f32 %v1858_v28, %v1854_v32 }
 0x440   :  { %2806 = vmatpush.msk.msra.mxu2 %vm52_vm0, %v1861_v6  ;;  %2808 = vmatpush.msk.msra.mxu3 %vm52_vm0, %v1862_v53 }
 0x441   :  { %2801 = vmatmul.msk.f32.vlgmr.msra.gmra.mxu0 %vm48_vm5, %v3162_v5  ;;  %2803 = vmatmul.msk.f32.vlgmr.msra.gmra.mxu1 %vm48_vm5, %v3162_v5 }
 0x442   :  { %2807 = vmatmul.msk.f32.vlgmr.msra.gmra.mxu2 %vm48_vm5, %v3229_v47  ;;  %2809 = vmatmul.msk.f32.vlgmr.msra.gmra.mxu3 %vm48_vm5, %v3229_v47 }
 0x443   :  { %v1994_v39 = vpop.permute.xlu0 %1993 }
 0x444   :  { %v1995_v16 = vsel %vm684_vm12, %v1992_v12, %v1994_v39  ;;  %v1996_v5 = vsel %vm684_vm12, %v1994_v39, %v1992_v12  ;;  %v1923_v17 = vpop.permute.xlu1 %1922 }
 0x445   :  { %v2003_v52 = vmul.f32 %v3938_v4, %v1995_v16  ;;  %v2004_v45 = vmul.f32 %v3937_v58, %v1996_v5  ;;  %v1924_v47 = vsel %vm610_vm10, %v1921_v42, %v1923_v17  ;;  %v1925_v38 = vsel %vm610_vm10, %v1923_v17, %v1921_v42 }
 0x446   :  { %v1932_v63 = vmul.f32 %v3942_v37, %v1924_v47  ;;  %v1933_v0 = vmul.f32 %v3941_v7, %v1925_v38 }
 0x447   :  { %2818 = vmatpush.msk.msrb.mxu2 %vm52_vm0, %v2003_v52  ;;  %2820 = vmatpush.msk.msrb.mxu3 %vm52_vm0, %v2004_v45 }
 0x448   :  { %2812 = vmatpush.msk.msrb.mxu0 %vm52_vm0, %v1932_v63  ;;  %2814 = vmatpush.msk.msrb.mxu1 %vm52_vm0, %v1933_v0 }
 0x449   :  { %2813 = vmatmul.msk.f32.vlgmr.msrb.gmra.mxu0 %vm48_vm5, %v3202_v23  ;;  %2815 = vmatmul.msk.f32.vlgmr.msrb.gmra.mxu1 %vm48_vm5, %v3202_v23 }
 0x44a   :  { %2819 = vmatmul.msk.f32.vlgmr.msrb.gmra.mxu2 %vm48_vm5, %v3272_v20  ;;  %2821 = vmatmul.msk.f32.vlgmr.msrb.gmra.mxu3 %vm48_vm5, %v3272_v20 }
 0x44c   :  { %v2063_v60 = vpop.permute.xlu1 %2062 }
 0x44d   :  { %v2066_v36 = vsel %vm758_vm13, %v2063_v60, %v2065_v62  ;;  %v2067_v1 = vsel %vm758_vm13, %v2065_v62, %v2063_v60 }
 0x44e   :  { %v2074_v23 = vmul.f32 %v3940_v44, %v2066_v36  ;;  %v2075_v55 = vmul.f32 %v3939_v56, %v2067_v1 }
 0x450   :  { %2824 = vmatpush.msk.msra.mxu0 %vm52_vm0, %v2074_v23  ;;  %2826 = vmatpush.msk.msra.mxu1 %vm52_vm0, %v2075_v55 }
 0x451   :  { %2825 = vmatmul.msk.f32.vlgmr.msra.gmra.mxu0 %vm48_vm5, %v3279_v21  ;;  %2827 = vmatmul.msk.f32.vlgmr.msra.gmra.mxu1 %vm48_vm5, %v3279_v21 }
 0x484   :  { %v955_v20 = vpop.f32.mrf.mxu2  ;;  %v975_v48 = vpop.f32.mrf.mxu3 }
 0x486   :  { %v912_v42 = vpop.f32.mrf.mxu0  ;;  %v932_v43 = vpop.f32.mrf.mxu1 }
 0x487   :  { %v956_v59 = vadd.f32 %v955_v20, %v912_v42  ;;  %v976_v32 = vadd.f32 %v975_v48, %v932_v43 }
 0x48e   :  { %v1008_v6 = vpop.f32.mrf.mxu0  ;;  %v1028_v53 = vpop.f32.mrf.mxu1 }
 0x48f   :  { %v1031_v12 = vadd.f32 %v1008_v6, %v956_v59  ;;  %v1032_v39 = vadd.f32 %v1028_v53, %v976_v32 }
 0x495   :  { %v1063_v16 = vpop.f32.mrf.mxu2  ;;  %v1083_v5 = vpop.f32.mrf.mxu3 }
 0x496   :  { %v1086_v17 = vadd.f32 %v1063_v16, %v1031_v12  ;;  %v1087_v52 = vadd.f32 %v1083_v5, %v1032_v39  ;;  %v1114_v45 = vpop.f32.mrf.mxu0  ;;  %v1134_v47 = vpop.f32.mrf.mxu1 }
 0x498   :  { %v1137_v38 = vadd.f32 %v1114_v45, %v1086_v17  ;;  %v1138_v63 = vadd.f32 %v1134_v47, %v1087_v52 }
 0x49d   :  { %v1169_v0 = vpop.f32.mrf.mxu2  ;;  %v1189_v21 = vpop.f32.mrf.mxu3 }
 0x49e   :  { %v1192_v62 = vadd.f32 %v1169_v0, %v1137_v38  ;;  %v1193_v60 = vadd.f32 %v1189_v21, %v1138_v63  ;;  %v1224_v36 = vpop.f32.mrf.mxu0  ;;  %v1244_v1 = vpop.f32.mrf.mxu1 }
 0x4a0   :  { %v1247_v23 = vadd.f32 %v1224_v36, %v1192_v62  ;;  %v1248_v55 = vadd.f32 %v1244_v1, %v1193_v60 }
 0x4a5   :  { %v1279_v20 = vpop.f32.mrf.mxu2  ;;  %v1299_v48 = vpop.f32.mrf.mxu3 }
 0x4a6   :  { %v1302_v42 = vadd.f32 %v1279_v20, %v1247_v23  ;;  %v1303_v43 = vadd.f32 %v1299_v48, %v1248_v55  ;;  %v1334_v59 = vpop.f32.mrf.mxu0  ;;  %v1354_v32 = vpop.f32.mrf.mxu1 }
 0x4a8   :  { %v3758_v6 = vadd.f32 %v1334_v59, %v1302_v42  ;;  %v3760_v53 = vadd.f32 %v1354_v32, %v1303_v43 }
 0x4ad   :  { %v3762_v12 = vpop.f32.mrf.mxu2  ;;  %v3764_v39 = vpop.f32.mrf.mxu3 }
 0x4ae   :  { %v1568_v16 = vpop.f32.mrf.mxu0  ;;  %v1588_v5 = vpop.f32.mrf.mxu1 }
 0x4b5   :  { %v1617_v17 = vpop.f32.mrf.mxu2  ;;  %v1637_v52 = vpop.f32.mrf.mxu3 }
 0x4b6   :  { %v1686_v45 = vpop.f32.mrf.mxu0  ;;  %v1706_v47 = vpop.f32.mrf.mxu1  ;;  %v1618_v38 = vadd.f32 %v1617_v17, %v1568_v16  ;;  %v1638_v63 = vadd.f32 %v1637_v52, %v1588_v5 }
 0x4b8   :  { %v1709_v36 = vadd.f32 %v1686_v45, %v1618_v38  ;;  %v1710_v1 = vadd.f32 %v1706_v47, %v1638_v63  ;;  %v2132_v38 = vpop.permute.xlu0 %2131 }
 0x4bd   :  { %v1757_v0 = vpop.f32.mrf.mxu2  ;;  %v1777_v21 = vpop.f32.mrf.mxu3 }
 0x4be   :  { %v1819_v62 = vpop.f32.mrf.mxu0  ;;  %v1839_v60 = vpop.f32.mrf.mxu1  ;;  %v1780_v23 = vadd.f32 %v1757_v0, %v1709_v36  ;;  %v1781_v55 = vadd.f32 %v1777_v21, %v1710_v1 }
 0x4c0   :  { %v1842_v42 = vadd.f32 %v1819_v62, %v1780_v23  ;;  %v1843_v43 = vadd.f32 %v1839_v60, %v1781_v55 }
 0x4c5   :  { %v1890_v20 = vpop.f32.mrf.mxu2  ;;  %v1910_v48 = vpop.f32.mrf.mxu3 }
 0x4c6   :  { %v1961_v59 = vpop.f32.mrf.mxu0  ;;  %v1981_v32 = vpop.f32.mrf.mxu1  ;;  %v1913_v58 = vadd.f32 %v1890_v20, %v1842_v42  ;;  %v1914_v4 = vadd.f32 %v1910_v48, %v1843_v43 }
 0x4c7   :  { %v2164_v48 = vpop.permute.xlu0 %2163 }
 0x4c8   :  { %v1984_v56 = vadd.f32 %v1961_v59, %v1913_v58  ;;  %v1985_v44 = vadd.f32 %v1981_v32, %v1914_v4 }
 0x4cd   :  { %v2032_v16 = vpop.f32.mrf.mxu2  ;;  %v2052_v5 = vpop.f32.mrf.mxu3 }
 0x4ce   :  { %v2055_v17 = vadd.f32 %v2032_v16, %v1984_v56  ;;  %v2056_v52 = vadd.f32 %v2052_v5, %v1985_v44  ;;  %v2103_v7 = vpop.f32.mrf.mxu0  ;;  %v2123_v37 = vpop.f32.mrf.mxu1 }
 0x4d0   :  { %v2126_v45 = vadd.f32 %v2103_v7, %v2055_v17  ;;  %v2127_v47 = vadd.f32 %v2123_v37, %v2056_v52 }
 0x4d2   :  { %v2134_v63 = vadd.f32 %v2132_v38, %v2126_v45  ;;  %v2135_v0 = vadd.f32 %v2132_v38, %v2127_v47  ;;  %v2171_v45 = vpop.permute.xlu0 %2170 }
 0x4d4   :  { %v2136_v21 = vadd.f32 %v2135_v0, %v2134_v63 }
 0x4d6   :  { %2137 = vadd.xlane.f32.xlu1 %v2136_v21  ;;  %v2655_v21 = vld [vmem:[%s3916_s8] sm:$0xff] }
 0x549   :  { %v2138_v62 = vpop.xlane.xlu1 %2137 }
 0x54a   :  { %v2139_v60 = vmul.f32 %v2138_v62, %v2981_v18 }
 0x54c   :  { %v2140_v36 = vsub.f32 %v2134_v63, %v2139_v60  ;;  %v2141_v1 = vsub.f32 %v2135_v0, %v2139_v60  ;;  %v38_v0 = vld [vmem:[%s3912_s4] sm:$0xff]  ;;  %s2919_s4 = smov [#allocation2]  }
 0x54d   :  { %s2672_s8 = sshll.u32 %s2919_s4, 4  ;;  %s2673_s8 = int_to_ptr.vmem [resolvable:$true] %s2672_s8 }
 0x54e   :  { %v2142_v58 = vmul.f32 %v2140_v36, %v2140_v36  ;;  %v2143_v4 = vmul.f32 %v2141_v1, %v2141_v1 }
 0x550   :  { %v2144_v23 = vadd.f32 %v2143_v4, %v2142_v58 }
 0x552   :  { %2145 = vadd.xlane.f32.xlu2 %v2144_v23 }
 0x5c5   :  { %v2146_v56 = vpop.xlane.xlu2 %2145 }
 0x5c6   :  { %v2147_v44 = vmul.f32 %v2146_v56, %v2981_v18 }
 0x5c8   :  { %v2148_v55 = vadd.f32 1e-05, %v2147_v44 }
 0x5ca   :  { %2879 = vrsqrt.f32 %v2148_v55  ;;  %vm2155_vm5 = vweird.f32 %v2148_v55 }
 0x5d0   :  { %v2880_v37 = vpop.eup %2879 }
 0x5d1   :  { %v2150_v7 = vmul.f32 %v2880_v37, %v2148_v55  ;;  %vm2156_vm0 = vweird.f32 %v2880_v37 }
 0x5d2   :  { %vm2157_vm15 = vmor %vm2155_vm5, %vm2156_vm0 }
 0x5d3   :  { %v2151_v20 = vmul.f32 %v2880_v37, %v2150_v7 }
 0x5d5   :  { %v2152_v42 = vmul.f32 0.5, %v2151_v20 }
 0x5d7   :  { %v2153_v43 = vsub.f32 1.5, %v2152_v42  ;;  %v3960_v42 = vperm.slane %v3320_v10, 0 }
 0x5d9   :  { %v2154_v59 = vmul.f32 %v2880_v37, %v2153_v43 }
 0x5db   :  { %v2158_v32 = vsel %vm2157_vm15, %v2880_v37, %v2154_v59 }
 0x5dc   :  { %v2159_v16 = vmul.f32 %v2158_v32, %v2140_v36  ;;  %v2160_v5 = vmul.f32 %v2158_v32, %v2141_v1 }
 0x5de   :  { %v2166_v17 = vmul.f32 %v2164_v48, %v2159_v16  ;;  %v2167_v52 = vmul.f32 %v2164_v48, %v2160_v5 }
 0x5e0   :  { %v2173_v47 = vadd.f32 %v2171_v45, %v2166_v17  ;;  %v2174_v18 = vadd.f32 %v2171_v45, %v2167_v52 }
 0x5e2   :  { %v2175_v38 = vmax.f32 %v2173_v47, 0.0  ;;  %v2176_v63 = vmax.f32 %v2174_v18, 0.0 }
 0x5e4   :  { %2179 = vrot.lane.b32.xlu2 %v2176_v63, %s2912_s16  ;;  %2283 = vrot.lane.b32.xlu1 %v2176_v63, %s2913_s17  ;;  %v2391_v43 = vmul.f32 %v2175_v38, %v3960_v42 }
 0x5e5   :  { %2186 = vrot.lane.b32.xlu0 %v2175_v38, %s2911_s15 }
 0x5ec   :  { %2439 = vrot.lane.b32.xlu2 %v2175_v38, %s2915_s19  ;;  %2493 = vrot.lane.b32.xlu1 %v2175_v38, %s2916_s20 }
 0x5ed   :  { %2188 = vrot.lane.b32.xlu0 %v2176_v63, %s2911_s15 }
 0x5f4   :  { %2603 = vrot.lane.b32.xlu2 %v2176_v63, %s2918_s24  ;;  %2441 = vrot.lane.b32.xlu1 %v2176_v63, %s2915_s19  ;;  %s2920_s19 = smov 256  }
 0x5f5   :  { %2281 = vrot.lane.b32.xlu0 %v2175_v38, %s2913_s17 }
 0x5fc   :  { %41 = vperm.xlu2 %2870, %v38_v0   ;;  %2547 = vrot.lane.b32.xlu1 %v2175_v38, %s2917_s23 }
 0x5fd   :  { %2177 = vrot.lane.b32.xlu0 %v2175_v38, %s2912_s16 }
 0x604   :  { %2658 = vperm.xlu2 %2870, %v2655_v21   ;;  %1362 = vperm.xlu1 %2868, %v2655_v21  }
 0x605   :  { %2335 = vrot.lane.b32.xlu0 %v2175_v38, %s2914_s18 }
 0x60d   :  { %2337 = vrot.lane.b32.xlu0 %v2176_v63, %s2914_s18  ;;  %s2674_s18 = sshll.u32 %s3917_s9, 4  ;;  %s2675_s18 = int_to_ptr.hbm [resolvable:$true] %s2674_s18 }
 0x615   :  { %2495 = vrot.lane.b32.xlu0 %v2176_v63, %s2916_s20 }
 0x61d   :  { %2601 = vrot.lane.b32.xlu0 %v2175_v38, %s2918_s24 }
 0x625   :  { %2549 = vrot.lane.b32.xlu0 %v2176_v63, %s2917_s23 }
 0x62d   :  { %1381 = vperm.xlu0 %2869, %v38_v0  }
 0x63e   :  { %v2180_v62 = vpop.permute.xlu2 %2179 }
 0x646   :  { %v2440_v4 = vpop.permute.xlu2 %2439 }
 0x656   :  { %v2284_v60 = vpop.permute.xlu1 %2283 }
 0x657   :  { %v2187_v36 = vpop.permute.xlu0 %2186 }
 0x65e   :  { %v3790_v1 = vpop.permute.xlu1 %2493 }
 0x65f   :  { %v2189_v58 = vpop.permute.xlu0 %2188 }
 0x660   :  { %v2190_v23 = vsel %vm203_vm6, %v2187_v36, %v2189_v58  ;;  %v2191_v56 = vsel %vm203_vm6, %v2189_v58, %v2187_v36  ;;  %v3965_v36 = vperm.slane %v3730_v35, 1 }
 0x661   :  { %v2192_v44 = vmul.f32 %v2191_v56, %v1535_v49  ;;  %v2193_v55 = vmul.f32 %v2190_v23, %v1536_v19  ;;  %v2604_v19 = vpop.permute.xlu2 %2603 }
 0x663   :  { %2213 = vmatpush.msra.mxu2 %v2192_v44  ;;  %2233 = vmatpush.msra.mxu3 %v2193_v55 }
 0x664   :  { %2829 = vmatmul.msk.f32.vlgmr.msra.gmra.mxu2 %vm891_vm14, %v3459_v30  ;;  %2830 = vmatmul.msk.f32.vlgmr.msra.gmra.mxu3 %vm891_vm14, %v3459_v30  ;;  %v3961_v30 = vperm.slane %v3320_v10, 1 }
 0x666   :  { %v2442_v37 = vpop.permute.xlu1 %2441  ;;  %v2392_v59 = vmul.f32 %v2176_v63, %v3961_v30 }
 0x667   :  { %v2282_v7 = vpop.permute.xlu0 %2281 }
 0x668   :  { %v2285_v20 = vsel %vm324_vm8, %v2282_v7, %v2284_v60  ;;  %v2286_v48 = vsel %vm324_vm8, %v2284_v60, %v2282_v7 }
 0x669   :  { %v2287_v40 = vmul.f32 %v2286_v48, %v1653_v26  ;;  %v2288_v49 = vmul.f32 %v2285_v20, %v1654_v46  ;;  %v42_v5 = vpop.permute.xlu2 %41 }
 0x66a   :  { %v95_v31 = vadd.f32 %v3305_v9, %v42_v5 }
 0x66b   :  { %2308 = vmatpush.msrb.mxu2 %v2287_v40  ;;  %2328 = vmatpush.msrb.mxu3 %v2288_v49 }
 0x66c   :  { %2834 = vmatmul.msk.f32.vlgmr.msrb.gmra.mxu2 %vm891_vm14, %v3482_v41  ;;  %2835 = vmatmul.msk.f32.vlgmr.msrb.gmra.mxu3 %vm891_vm14, %v3482_v41 }
 0x66d   :  { %2412 = vmatpush.msra.mxu2 %v2391_v43  ;;  %2432 = vmatpush.msra.mxu3 %v2392_v59 }
 0x66e   :  { %v2548_v26 = vpop.permute.xlu1 %2547 }
 0x66f   :  { %v2178_v34 = vpop.permute.xlu0 %2177 }
 0x670   :  { %v2181_v46 = vsel %vm182_vm7, %v2178_v34, %v2180_v62  ;;  %v2182_v32 = vsel %vm182_vm7, %v2180_v62, %v2178_v34  ;;  %v3964_v62 = vperm.slane %v3730_v35, 0  ;;  %v3967_v35 = vperm.slane %v3688_v51, 1 }
 0x671   :  { %v2183_v10 = vmul.f32 %v2182_v32, %v1515_v29  ;;  %v2184_v16 = vmul.f32 %v2181_v46, %v1516_v11  ;;  %v75_v29 = vadd.f32 %v3303_v2, %v42_v5 }
 0x673   :  { %2256 = vmatpush.msrb.mxu0 %v2183_v10  ;;  %2276 = vmatpush.msrb.mxu1 %v2184_v16 }
 0x674   :  { %2831 = vmatmul.msk.f32.vlgmr.msrb.gmra.mxu0 %vm891_vm14, %v3434_v54  ;;  %2832 = vmatmul.msk.f32.vlgmr.msrb.gmra.mxu1 %vm891_vm14, %v3434_v54  ;;  %v2443_v54 = vsel %vm536_vm11, %v2440_v4, %v2442_v37 }
 0x675   :  { %2840 = vmatmul.msk.f32.vlgmr.msra.gmra.mxu2 %vm891_vm14, %v3516_v61  ;;  %2841 = vmatmul.msk.f32.vlgmr.msra.gmra.mxu3 %vm891_vm14, %v3516_v61  ;;  %v2444_v61 = vsel %vm536_vm11, %v2442_v37, %v2440_v4  ;;  %v2445_v38 = vmul.f32 %v2443_v54, %v1857_v27  ;;  %v3966_v4 = vperm.slane %v3688_v51, 0 }
 0x676   :  { %v1363_v41 = vpop.permute.xlu1 %1362  ;;  %v2446_v63 = vmul.f32 %v2444_v61, %v1858_v28  ;;  %v3963_v28 = vperm.slane %v3693_v50, 1 }
 0x677   :  { %v1365_v11 = vadd.f32 %v1363_v41, %v3758_v6  ;;  %v1366_v17 = vadd.f32 %v1363_v41, %v3760_v53  ;;  %v2336_v52 = vpop.permute.xlu0 %2335 }
 0x679   :  { %v1367_v45 = vadd.f32 %v1365_v11, %v75_v29  ;;  %v1368_v47 = vadd.f32 %v1366_v17, %v95_v31 }
 0x67b   :  { %1369 = vst [vmem:[#allocation2] sm:$0xff] %v1367_v45 }
 0x67c   :  { %1370 = vst [vmem:[#allocation2 + $0x8] sm:$0xff] %v1368_v47 }
 0x67f   :  { %v2338_v18 = vpop.permute.xlu0 %2337 }
 0x680   :  { %v2339_v2 = vsel %vm398_vm9, %v2336_v52, %v2338_v18  ;;  %v2340_v9 = vsel %vm398_vm9, %v2338_v18, %v2336_v52 }
 0x681   :  { %v2341_v6 = vmul.f32 %v2340_v9, %v1724_v14  ;;  %v2342_v53 = vmul.f32 %v2339_v2, %v1725_v57  ;;  %v2659_v2 = vpop.permute.xlu2 %2658 }
 0x683   :  { %2362 = vmatpush.msra.mxu0 %v2341_v6  ;;  %2382 = vmatpush.msra.mxu1 %v2342_v53 }
 0x684   :  { %2837 = vmatmul.msk.f32.vlgmr.msra.gmra.mxu0 %vm891_vm14, %v3487_v3  ;;  %2838 = vmatmul.msk.f32.vlgmr.msra.gmra.mxu1 %vm891_vm14, %v3487_v3 }
 0x685   :  { %2466 = vmatpush.msrb.mxu0 %v2445_v38  ;;  %2486 = vmatpush.msrb.mxu1 %v2446_v63 }
 0x687   :  { %v2496_v14 = vpop.permute.xlu0 %2495 }
 0x688   :  { %v2497_v22 = vsel %vm610_vm10, %v3790_v1, %v2496_v14  ;;  %v2498_v57 = vsel %vm610_vm10, %v2496_v14, %v3790_v1 }
 0x689   :  { %v2499_v27 = vmul.f32 %v2497_v22, %v3962_v15  ;;  %v2500_v0 = vmul.f32 %v2498_v57, %v3963_v28 }
 0x68b   :  { %2520 = vmatpush.msrb.mxu2 %v2499_v27  ;;  %2540 = vmatpush.msrb.mxu3 %v2500_v0 }
 0x68c   :  { %2846 = vmatmul.msk.f32.vlgmr.msrb.gmra.mxu2 %vm891_vm14, %v3549_v25  ;;  %2847 = vmatmul.msk.f32.vlgmr.msrb.gmra.mxu3 %vm891_vm14, %v3549_v25 }
 0x68d   :  { %2843 = vmatmul.msk.f32.vlgmr.msrb.gmra.mxu0 %vm891_vm14, %v3521_v8  ;;  %2844 = vmatmul.msk.f32.vlgmr.msrb.gmra.mxu1 %vm891_vm14, %v3521_v8 }
 0x68f   :  { %v2602_v3 = vpop.permute.xlu0 %2601 }
 0x690   :  { %v2605_v21 = vsel %vm758_vm13, %v2602_v3, %v2604_v19  ;;  %v2606_v50 = vsel %vm758_vm13, %v2604_v19, %v2602_v3 }
 0x691   :  { %v2607_v60 = vmul.f32 %v2605_v21, %v3964_v62  ;;  %v2608_v1 = vmul.f32 %v2606_v50, %v3965_v36 }
 0x693   :  { %2628 = vmatpush.msra.mxu2 %v2607_v60  ;;  %2648 = vmatpush.msra.mxu3 %v2608_v1 }
 0x694   :  { %2852 = vmatmul.msk.f32.vlgmr.msra.gmra.mxu2 %vm891_vm14, %v3589_v13  ;;  %2853 = vmatmul.msk.f32.vlgmr.msra.gmra.mxu3 %vm891_vm14, %v3589_v13 }
 0x697   :  { %v2550_v8 = vpop.permute.xlu0 %2549 }
 0x698   :  { %v2551_v25 = vsel %vm684_vm12, %v2548_v26, %v2550_v8  ;;  %v2552_v58 = vsel %vm684_vm12, %v2550_v8, %v2548_v26 }
 0x699   :  { %v2553_v23 = vmul.f32 %v2551_v25, %v3966_v4  ;;  %v2554_v56 = vmul.f32 %v2552_v58, %v3967_v35 }
 0x69b   :  { %2574 = vmatpush.msra.mxu0 %v2553_v23  ;;  %2594 = vmatpush.msra.mxu1 %v2554_v56 }
 0x69c   :  { %2849 = vmatmul.msk.f32.vlgmr.msra.gmra.mxu0 %vm891_vm14, %v3558_v33  ;;  %2850 = vmatmul.msk.f32.vlgmr.msra.gmra.mxu1 %vm891_vm14, %v3558_v33 }
 0x69f   :  { %v1382_v54 = vpop.permute.xlu0 %1381 }
 0x6a0   :  { %v1413_v9 = vadd.f32 %v3762_v12, %v1382_v54  ;;  %v1433_v6 = vadd.f32 %v3764_v39, %v1382_v54 }
 0x6e7   :  { %v2215_v13 = vpop.f32.mrf.mxu2  ;;  %v2235_v44 = vpop.f32.mrf.mxu3 }
 0x6ef   :  { %v2310_v24 = vpop.f32.mrf.mxu2  ;;  %v2330_v7 = vpop.f32.mrf.mxu3 }
 0x6f1   :  { %v2258_v55 = vpop.f32.mrf.mxu0  ;;  %v2278_v37 = vpop.f32.mrf.mxu1 }
 0x6f2   :  { %v2259_v51 = vadd.f32 %v2258_v55, %v2215_v13  ;;  %v2279_v19 = vadd.f32 %v2278_v37, %v2235_v44 }
 0x6f4   :  { %v2333_v42 = vadd.f32 %v2310_v24, %v2259_v51  ;;  %v2334_v43 = vadd.f32 %v2330_v7, %v2279_v19 }
 0x6f8   :  { %v2414_v40 = vpop.f32.mrf.mxu2  ;;  %v2434_v49 = vpop.f32.mrf.mxu3 }
 0x701   :  { %v2364_v20 = vpop.f32.mrf.mxu0  ;;  %v2384_v48 = vpop.f32.mrf.mxu1 }
 0x702   :  { %v2387_v30 = vadd.f32 %v2364_v20, %v2333_v42  ;;  %v2388_v59 = vadd.f32 %v2384_v48, %v2334_v43 }
 0x704   :  { %v2437_v32 = vadd.f32 %v2414_v40, %v2387_v30  ;;  %v2438_v10 = vadd.f32 %v2434_v49, %v2388_v59 }
 0x70a   :  { %v2468_v46 = vpop.f32.mrf.mxu0  ;;  %v2488_v33 = vpop.f32.mrf.mxu1 }
 0x70b   :  { %v2491_v16 = vadd.f32 %v2468_v46, %v2437_v32  ;;  %v2492_v5 = vadd.f32 %v2488_v33, %v2438_v10 }
 0x70f   :  { %v2522_v26 = vpop.f32.mrf.mxu2  ;;  %v2542_v34 = vpop.f32.mrf.mxu3 }
 0x710   :  { %v2545_v41 = vadd.f32 %v2522_v26, %v2491_v16  ;;  %v2546_v29 = vadd.f32 %v2542_v34, %v2492_v5 }
 0x717   :  { %v2630_v31 = vpop.f32.mrf.mxu2  ;;  %v2650_v11 = vpop.f32.mrf.mxu3 }
 0x719   :  { %v2576_v17 = vpop.f32.mrf.mxu0  ;;  %v2596_v52 = vpop.f32.mrf.mxu1 }
 0x71a   :  { %v2599_v45 = vadd.f32 %v2576_v17, %v2545_v41  ;;  %v2600_v47 = vadd.f32 %v2596_v52, %v2546_v29 }
 0x71c   :  { %v2653_v61 = vadd.f32 %v2630_v31, %v2599_v45  ;;  %v2654_v18 = vadd.f32 %v2650_v11, %v2600_v47 }
 0x71e   :  { %v2661_v53 = vadd.f32 %v2659_v2, %v2653_v61  ;;  %v2662_v38 = vadd.f32 %v2659_v2, %v2654_v18 }
 0x720   :  { %v2663_v63 = vadd.f32 %v2661_v53, %v1413_v9  ;;  %v2664_v14 = vadd.f32 %v2662_v38, %v1433_v6 }
 0x722   :  { %2666 = vst [vmem:[#allocation2 + $0x10] sm:$0xff] %v2663_v63 }
 0x723   :  { %2667 = vst [vmem:[#allocation2 + $0x18] sm:$0xff] %v2664_v14 }
 0x724   :  { %2680 = dma.vmem_to_hbm [thread:$0]  %s2673_s8, 512, %s2675_s18, [#allocation3], %s2920_s19, %s2920_s19, %s2911_s15  }
 0x725   :  { %2905 = dma.done.wait [#allocation3], 512  }
 0x726   :  { %2906 = vsyncadd [#allocation3], 4294966784 }
 0x727   :  { %2685 = vsyncpa [#allocation3], 1 }

</bundles_post_ra>
